<compile_context>
chip_gen: v6e
topology: v6e:2x2x1
jax: 0.10.0
libtpu: 0.0.40
codegen_flags: <defaults>
</compile_context>

<pallas_src>
import functools
import math

import jax
import jax.numpy as jnp
from jax import lax
from jax.experimental import pallas as pl
from jax.experimental.pallas import tpu as pltpu


def _round_up(n, m):
    return (n + m - 1) // m * m


# ----------------------------------------------------------------------------
# Fused encoder kernel: one grid step == one batch element, all stages fused.
# refs = [x, (w1, b1, w2, b2, w3, b3) * n_stages, out, pad_scratch]
# ----------------------------------------------------------------------------
def _encoder_kernel(*refs, n_stages, T, c_in, c_hid, neg_slope, compute_dtype):
    x_ref = refs[0]
    o_ref = refs[1 + 6 * n_stages]
    pad_ref = refs[2 + 6 * n_stages]
    w_refs = refs[1:1 + 6 * n_stages]

    # Zero the halo scratch once.  Only rows 0 and T+1 (the conv "same" padding)
    # need to stay zero; rows 1..T are overwritten before every use.
    pad_ref[...] = jnp.zeros(pad_ref.shape, pad_ref.dtype)

    def conv(v, c, w_ref, b_ref):
        # v: (T, c) f32 activation.  Conv1d(k=3, stride=1, pad=1) as a single
        # im2col matmul (T, 3c) @ (3c, Cout) on the MXU, f32 accumulation.
        pad_ref[1:T + 1, 0:c] = v
        cat = jnp.concatenate(
            [pad_ref[0:T, 0:c],        # x[t-1]  (tap k=0, zero at t=0)
             pad_ref[1:T + 1, 0:c],    # x[t]    (tap k=1)
             pad_ref[2:T + 2, 0:c]],   # x[t+1]  (tap k=2, zero at t=T-1)
            axis=-1).astype(compute_dtype)
        return (jnp.dot(cat, w_ref[...], preferred_element_type=jnp.float32)
                + b_ref[...])                              # bias broadcasts over T

    h = x_ref[0].astype(jnp.float32)                       # (T, c_in)
    c = c_in
    y = None
    for s in range(n_stages):
        w1, b1, w2, b2, w3, b3 = w_refs[6 * s:6 * s + 6]
        # Conv1d -> LeakyReLU(0.2)
        a = conv(h, c, w1, b1)
        a = jnp.where(a > 0, a, neg_slope * a)
        # ResBlock: Conv -> LeakyReLU(0.2) -> Conv, + skip
        r = conv(a, c_hid, w2, b2)
        r = jnp.where(r > 0, r, neg_slope * r)
        y = conv(r, c_hid, w3, b3) + a
        h = y
        c = c_hid
    o_ref[0] = y.astype(o_ref.dtype)


# ----------------------------------------------------------------------------
# Wrapper: (B, T, vae_test_dim) f32 -> (B, T, vae_length) f32, == VQEncoderV6.forward
# ----------------------------------------------------------------------------
def vq_encoder_v6_forward(x, params, *, compute_dtype=jnp.bfloat16):
    B, T, d_in = x.shape
    n_stages = len(params)
    cin_pad = params[0]["w1"].shape[0] // 3
    c_pad = params[0]["w1"].shape[1]
    cout = params[0]["cout"]
    cmax = max(cin_pad, c_pad)

    # One-time channel pad of the raw input to a lane multiple + cast for the MXU.
    xp = jnp.pad(x, ((0, 0), (0, 0), (0, cin_pad - d_in))).astype(compute_dtype)

    args = [xp]
    in_specs = [pl.BlockSpec((1, T, cin_pad), lambda b: (b, 0, 0))]
    for st in params:
        for name in ("w1", "b1", "w2", "b2", "w3", "b3"):
            a = st[name]
            if name[0] == "w":
                a = a.astype(compute_dtype)    # bf16 weights; biases stay f32
            args.append(a)
            # Constant index_map -> weights/biases stay resident in VMEM.
            in_specs.append(pl.BlockSpec(a.shape, lambda b: (0, 0)))

    kernel = functools.partial(
        _encoder_kernel, n_stages=n_stages, T=T, c_in=cin_pad, c_hid=c_pad,
        neg_slope=0.2, compute_dtype=compute_dtype)

    out = pl.pallas_call(
        kernel,
        grid=(B,),
        in_specs=in_specs,
        out_specs=pl.BlockSpec((1, T, c_pad), lambda b: (b, 0, 0)),
        out_shape=jax.ShapeDtypeStruct((B, T, c_pad), jnp.float32),
        scratch_shapes=[pltpu.VMEM((T + 2, cmax), jnp.float32)],
        compiler_params=pltpu.CompilerParams(
            dimension_semantics=("parallel",),     # v7x: shard batch over 2 TCs
            vmem_limit_bytes=32 * 1024 * 1024,
        ),
    )(*args)
    # TODO(synk): for very long sequences on v7x (64 MiB VMEM), tile T with a
    # per-stage halo instead of keeping the full sequence per batch element.
    return out[:, :, :cout]


# ----------------------------------------------------------------------------
# Parameter init (xavier_normal_ weights, zero bias), matching init_weight().
# Packed layout: im2col weight (3*Cin_pad, Cout_pad); torch layout kept for ref.
# ----------------------------------------------------------------------------
def _xavier_normal_conv1d(key, cin, cout, k=3):
    fan_in, fan_out = cin * k, cout * k
    std = math.sqrt(2.0 / (fan_in + fan_out))
    return jax.random.normal(key, (cout, cin, k), dtype=jnp.float32) * std


def _pack_w(w_torch, cin_pad, cout_pad):
    cout, cin, k = w_torch.shape
    w = jnp.transpose(w_torch, (2, 1, 0))                              # (3, Cin, Cout)
    w = jnp.pad(w, ((0, 0), (0, cin_pad - cin), (0, cout_pad - cout)))
    return w.reshape(k * cin_pad, cout_pad)                            # tap-major rows


def _pack_b(b, cout_pad):
    return jnp.pad(b, (0, cout_pad - b.shape[0])).reshape(1, cout_pad)


def init_vq_encoder_v6_params(key, vae_test_dim, vae_length, vae_layer):
    c_pad = _round_up(vae_length, 128)
    params = []
    cin = vae_test_dim
    for _ in range(vae_layer):
        cin_pad = _round_up(cin, 128)
        key, k0, k1, k2 = jax.random.split(key, 4)
        w1_t = _xavier_normal_conv1d(k0, cin, vae_length)
        w2_t = _xavier_normal_conv1d(k1, vae_length, vae_length)
        w3_t = _xavier_normal_conv1d(k2, vae_length, vae_length)
        zb = jnp.zeros((vae_length,), jnp.float32)
        params.append(dict(
            w1=_pack_w(w1_t, cin_pad, c_pad), b1=_pack_b(zb, c_pad),
            w2=_pack_w(w2_t, c_pad, c_pad),   b2=_pack_b(zb, c_pad),
            w3=_pack_w(w3_t, c_pad, c_pad),   b3=_pack_b(zb, c_pad),
            raw=dict(w1=w1_t, b1=zb, w2=w2_t, b2=zb, w3=w3_t, b3=zb),
            cout=vae_length,
        ))
        cin = vae_length
    return params


# ----------------------------------------------------------------------------
# Independent pure-JAX reference (lax conv).  `compute_dtype` mirrors the
# kernel's cast points (bf16 matmul inputs, f32 accumulation & elementwise).
# ----------------------------------------------------------------------------
def _ref_forward(x, params, compute_dtype=jnp.float32):
    def conv(h, w_t, b):
        hn = jnp.transpose(h.astype(compute_dtype), (0, 2, 1))          # NCW
        y = lax.conv_general_dilated(
            hn, w_t.astype(compute_dtype), (1,), ((1, 1),),
            dimension_numbers=("NCH", "OIH", "NCH"),
            preferred_element_type=jnp.float32)
        return jnp.transpose(y, (0, 2, 1)) + b[None, None, :]

    lrelu = lambda v: jnp.where(v > 0, v, 0.2 * v)
    h = x.astype(jnp.float32)
    for st in params:
        raw = st["raw"]
        a = lrelu(conv(h, raw["w1"], raw["b1"]))
        r = lrelu(conv(a, raw["w2"], raw["b2"]))
        h = conv(r, raw["w3"], raw["b3"]) + a
    return h


if __name__ == "__main__":
    # Small config implied by the module: vae_test_dim (input feat dim),
    # vae_length (channels), vae_layer (number of stages).
    B, T = 2, 8
    vae_test_dim, vae_length, vae_layer = 16, 32, 2

    key = jax.random.PRNGKey(0)
    kx, kp = jax.random.split(key)
    x = jax.random.normal(kx, (B, T, vae_test_dim), dtype=jnp.float32)
    params = init_vq_encoder_v6_params(kp, vae_test_dim, vae_length, vae_layer)

    # f32 path: exact check against the independent lax.conv reference.
    out_f32 = jax.block_until_ready(
        vq_encoder_v6_forward(x, params, compute_dtype=jnp.float32))
    assert out_f32.shape == (B, T, vae_length), out_f32.shape
    ref_f32 = _ref_forward(x, params, compute_dtype=jnp.float32)
    assert jnp.allclose(out_f32, ref_f32, atol=1e-4, rtol=1e-4), (
        float(jnp.max(jnp.abs(out_f32 - ref_f32))))

    # bf16 fast path (default): bf16 MXU inputs, f32 accumulation.  Checked
    # loosely against the mirrored-cast reference (bf16 rounding only).
    out_bf16 = jax.block_until_ready(
        vq_encoder_v6_forward(x, params, compute_dtype=jnp.bfloat16))
    assert out_bf16.shape == (B, T, vae_length), out_bf16.shape
    ref_bf16 = _ref_forward(x, params, compute_dtype=jnp.bfloat16)
    assert jnp.allclose(out_bf16, ref_bf16, atol=1.5e-1, rtol=1.5e-1), (
        float(jnp.max(jnp.abs(out_bf16 - ref_bf16))))

    print("KERNEL_OK")
</pallas_src>

<mosaic_0001>
module attributes {stable_mosaic.version = 11 : i64} {
  func.func @_encoder_kernel(%arg0: i32, %arg1: memref<1x8x128xf32, #tpu.memory_space<vmem>>, %arg2: memref<384x128xf32, #tpu.memory_space<vmem>>, %arg3: memref<1x128xf32, #tpu.memory_space<vmem>>, %arg4: memref<384x128xf32, #tpu.memory_space<vmem>>, %arg5: memref<1x128xf32, #tpu.memory_space<vmem>>, %arg6: memref<384x128xf32, #tpu.memory_space<vmem>>, %arg7: memref<1x128xf32, #tpu.memory_space<vmem>>, %arg8: memref<384x128xf32, #tpu.memory_space<vmem>>, %arg9: memref<1x128xf32, #tpu.memory_space<vmem>>, %arg10: memref<384x128xf32, #tpu.memory_space<vmem>>, %arg11: memref<1x128xf32, #tpu.memory_space<vmem>>, %arg12: memref<384x128xf32, #tpu.memory_space<vmem>>, %arg13: memref<1x128xf32, #tpu.memory_space<vmem>>, %arg14: memref<1x8x128xf32, #tpu.memory_space<vmem>>, %arg15: memref<10x128xf32, #tpu.memory_space<vmem>>) attributes {dimension_semantics = [#tpu.dimension_semantics<parallel>], iteration_bounds = array<i64: 2>, scalar_prefetch = 0 : i64, scratch_operands = 1 : i64, tpu.core_type = #tpu.core_type<tc>, window_params = [{transform_indices = @transform_0, window_bounds = array<i64: 1, 8, 128>}, {pipeline_mode = #tpu.pipeline_mode<synchronous>, transform_indices = @transform_1, window_bounds = array<i64: 384, 128>}, {pipeline_mode = #tpu.pipeline_mode<synchronous>, transform_indices = @transform_2, window_bounds = array<i64: 1, 128>}, {pipeline_mode = #tpu.pipeline_mode<synchronous>, transform_indices = @transform_3, window_bounds = array<i64: 384, 128>}, {pipeline_mode = #tpu.pipeline_mode<synchronous>, transform_indices = @transform_4, window_bounds = array<i64: 1, 128>}, {pipeline_mode = #tpu.pipeline_mode<synchronous>, transform_indices = @transform_5, window_bounds = array<i64: 384, 128>}, {pipeline_mode = #tpu.pipeline_mode<synchronous>, transform_indices = @transform_6, window_bounds = array<i64: 1, 128>}, {pipeline_mode = #tpu.pipeline_mode<synchronous>, transform_indices = @transform_7, window_bounds = array<i64: 384, 128>}, {pipeline_mode = #tpu.pipeline_mode<synchronous>, transform_indices = @transform_8, window_bounds = array<i64: 1, 128>}, {pipeline_mode = #tpu.pipeline_mode<synchronous>, transform_indices = @transform_9, window_bounds = array<i64: 384, 128>}, {pipeline_mode = #tpu.pipeline_mode<synchronous>, transform_indices = @transform_10, window_bounds = array<i64: 1, 128>}, {pipeline_mode = #tpu.pipeline_mode<synchronous>, transform_indices = @transform_11, window_bounds = array<i64: 384, 128>}, {pipeline_mode = #tpu.pipeline_mode<synchronous>, transform_indices = @transform_12, window_bounds = array<i64: 1, 128>}, {transform_indices = @transform_13, window_bounds = array<i64: 1, 8, 128>}]} {
    %cst = arith.constant 0.000000e+00 : f32
    %0 = vector.broadcast %cst : f32 to vector<10x128xf32>
    %c0 = arith.constant 0 : index
    %c0_0 = arith.constant 0 : index
    %1 = vector.load %arg15[%c0, %c0_0] : memref<10x128xf32, #tpu.memory_space<vmem>>, vector<10x128xf32>
    tpu.vector_store %arg15[%c0, %c0_0], %0 {strides = array<i32>} : memref<10x128xf32, #tpu.memory_space<vmem>>, vector<10x128xf32>,
    %c0_1 = arith.constant 0 : index
    %c0_2 = arith.constant 0 : index
    %c0_3 = arith.constant 0 : index
    %2 = vector.load %arg1[%c0_1, %c0_2, %c0_3] : memref<1x8x128xf32, #tpu.memory_space<vmem>>, vector<1x8x128xf32>
    %3 = vector.shape_cast %2 : vector<1x8x128xf32> to vector<8x128xf32>
    %c1 = arith.constant 1 : index
    %c0_4 = arith.constant 0 : index
    %4 = vector.load %arg15[%c1, %c0_4] : memref<10x128xf32, #tpu.memory_space<vmem>>, vector<8x128xf32>
    tpu.vector_store %arg15[%c1, %c0_4], %3 {strides = array<i32>} : memref<10x128xf32, #tpu.memory_space<vmem>>, vector<8x128xf32>,
    %c0_5 = arith.constant 0 : index
    %c0_6 = arith.constant 0 : index
    %5 = vector.load %arg15[%c0_5, %c0_6] : memref<10x128xf32, #tpu.memory_space<vmem>>, vector<8x128xf32>
    %c1_7 = arith.constant 1 : index
    %c0_8 = arith.constant 0 : index
    %6 = vector.load %arg15[%c1_7, %c0_8] : memref<10x128xf32, #tpu.memory_space<vmem>>, vector<8x128xf32>
    %c2 = arith.constant 2 : index
    %c0_9 = arith.constant 0 : index
    %7 = vector.load %arg15[%c2, %c0_9] : memref<10x128xf32, #tpu.memory_space<vmem>>, vector<8x128xf32>
    %8 = tpu.concatenate %5, %6, %7 in 1 : vector<8x128xf32>, vector<8x128xf32>, vector<8x128xf32> -> vector<8x384xf32>
    %c0_10 = arith.constant 0 : index
    %c0_11 = arith.constant 0 : index
    %9 = vector.load %arg2[%c0_10, %c0_11] : memref<384x128xf32, #tpu.memory_space<vmem>>, vector<384x128xf32>
    %cst_12 = arith.constant dense<0.000000e+00> : vector<8x128xf32>
    %10 = tpu.matmul %8, %9, %cst_12 {dimension_numbers = #tpu.dot_dimension_numbers<[1], [0], [0], [1], [0, 0, 1, 1], [], []>} : vector<8x384xf32>, vector<384x128xf32>, vector<8x128xf32> -> vector<8x128xf32>
    %c0_13 = arith.constant 0 : index
    %c0_14 = arith.constant 0 : index
    %11 = vector.load %arg3[%c0_13, %c0_14] : memref<1x128xf32, #tpu.memory_space<vmem>>, vector<1x128xf32>
    %12 = vector.broadcast %11 : vector<1x128xf32> to vector<8x128xf32>
    %13 = arith.addf %10, %12 : vector<8x128xf32>
    %cst_15 = arith.constant 0.000000e+00 : f32
    %14 = vector.broadcast %cst_15 : f32 to vector<8x128xf32>
    %15 = arith.cmpf ogt, %13, %14 : vector<8x128xf32>
    %cst_16 = arith.constant 2.000000e-01 : f32
    %16 = vector.broadcast %cst_16 : f32 to vector<8x128xf32>
    %17 = arith.mulf %16, %13 : vector<8x128xf32>
    %18 = arith.select %15, %13, %17 : vector<8x128xi1>, vector<8x128xf32>
    %c1_17 = arith.constant 1 : index
    %c0_18 = arith.constant 0 : index
    %19 = vector.load %arg15[%c1_17, %c0_18] : memref<10x128xf32, #tpu.memory_space<vmem>>, vector<8x128xf32>
    tpu.vector_store %arg15[%c1_17, %c0_18], %18 {strides = array<i32>} : memref<10x128xf32, #tpu.memory_space<vmem>>, vector<8x128xf32>,
    %c0_19 = arith.constant 0 : index
    %c0_20 = arith.constant 0 : index
    %20 = vector.load %arg15[%c0_19, %c0_20] : memref<10x128xf32, #tpu.memory_space<vmem>>, vector<8x128xf32>
    %c1_21 = arith.constant 1 : index
    %c0_22 = arith.constant 0 : index
    %21 = vector.load %arg15[%c1_21, %c0_22] : memref<10x128xf32, #tpu.memory_space<vmem>>, vector<8x128xf32>
    %c2_23 = arith.constant 2 : index
    %c0_24 = arith.constant 0 : index
    %22 = vector.load %arg15[%c2_23, %c0_24] : memref<10x128xf32, #tpu.memory_space<vmem>>, vector<8x128xf32>
    %23 = tpu.concatenate %20, %21, %22 in 1 : vector<8x128xf32>, vector<8x128xf32>, vector<8x128xf32> -> vector<8x384xf32>
    %c0_25 = arith.constant 0 : index
    %c0_26 = arith.constant 0 : index
    %24 = vector.load %arg4[%c0_25, %c0_26] : memref<384x128xf32, #tpu.memory_space<vmem>>, vector<384x128xf32>
    %cst_27 = arith.constant dense<0.000000e+00> : vector<8x128xf32>
    %25 = tpu.matmul %23, %24, %cst_27 {dimension_numbers = #tpu.dot_dimension_numbers<[1], [0], [0], [1], [0, 0, 1, 1], [], []>} : vector<8x384xf32>, vector<384x128xf32>, vector<8x128xf32> -> vector<8x128xf32>
    %c0_28 = arith.constant 0 : index
    %c0_29 = arith.constant 0 : index
    %26 = vector.load %arg5[%c0_28, %c0_29] : memref<1x128xf32, #tpu.memory_space<vmem>>, vector<1x128xf32>
    %27 = vector.broadcast %26 : vector<1x128xf32> to vector<8x128xf32>
    %28 = arith.addf %25, %27 : vector<8x128xf32>
    %cst_30 = arith.constant 0.000000e+00 : f32
    %29 = vector.broadcast %cst_30 : f32 to vector<8x128xf32>
    %30 = arith.cmpf ogt, %28, %29 : vector<8x128xf32>
    %cst_31 = arith.constant 2.000000e-01 : f32
    %31 = vector.broadcast %cst_31 : f32 to vector<8x128xf32>
    %32 = arith.mulf %31, %28 : vector<8x128xf32>
    %33 = arith.select %30, %28, %32 : vector<8x128xi1>, vector<8x128xf32>
    %c1_32 = arith.constant 1 : index
    %c0_33 = arith.constant 0 : index
    %34 = vector.load %arg15[%c1_32, %c0_33] : memref<10x128xf32, #tpu.memory_space<vmem>>, vector<8x128xf32>
    tpu.vector_store %arg15[%c1_32, %c0_33], %33 {strides = array<i32>} : memref<10x128xf32, #tpu.memory_space<vmem>>, vector<8x128xf32>,
    %c0_34 = arith.constant 0 : index
    %c0_35 = arith.constant 0 : index
    %35 = vector.load %arg15[%c0_34, %c0_35] : memref<10x128xf32, #tpu.memory_space<vmem>>, vector<8x128xf32>
    %c1_36 = arith.constant 1 : index
    %c0_37 = arith.constant 0 : index
    %36 = vector.load %arg15[%c1_36, %c0_37] : memref<10x128xf32, #tpu.memory_space<vmem>>, vector<8x128xf32>
    %c2_38 = arith.constant 2 : index
    %c0_39 = arith.constant 0 : index
    %37 = vector.load %arg15[%c2_38, %c0_39] : memref<10x128xf32, #tpu.memory_space<vmem>>, vector<8x128xf32>
    %38 = tpu.concatenate %35, %36, %37 in 1 : vector<8x128xf32>, vector<8x128xf32>, vector<8x128xf32> -> vector<8x384xf32>
    %c0_40 = arith.constant 0 : index
    %c0_41 = arith.constant 0 : index
    %39 = vector.load %arg6[%c0_40, %c0_41] : memref<384x128xf32, #tpu.memory_space<vmem>>, vector<384x128xf32>
    %cst_42 = arith.constant dense<0.000000e+00> : vector<8x128xf32>
    %40 = tpu.matmul %38, %39, %cst_42 {dimension_numbers = #tpu.dot_dimension_numbers<[1], [0], [0], [1], [0, 0, 1, 1], [], []>} : vector<8x384xf32>, vector<384x128xf32>, vector<8x128xf32> -> vector<8x128xf32>
    %c0_43 = arith.constant 0 : index
    %c0_44 = arith.constant 0 : index
    %41 = vector.load %arg7[%c0_43, %c0_44] : memref<1x128xf32, #tpu.memory_space<vmem>>, vector<1x128xf32>
    %42 = vector.broadcast %41 : vector<1x128xf32> to vector<8x128xf32>
    %43 = arith.addf %40, %42 : vector<8x128xf32>
    %44 = arith.addf %43, %18 : vector<8x128xf32>
    %c1_45 = arith.constant 1 : index
    %c0_46 = arith.constant 0 : index
    %45 = vector.load %arg15[%c1_45, %c0_46] : memref<10x128xf32, #tpu.memory_space<vmem>>, vector<8x128xf32>
    tpu.vector_store %arg15[%c1_45, %c0_46], %44 {strides = array<i32>} : memref<10x128xf32, #tpu.memory_space<vmem>>, vector<8x128xf32>,
    %c0_47 = arith.constant 0 : index
    %c0_48 = arith.constant 0 : index
    %46 = vector.load %arg15[%c0_47, %c0_48] : memref<10x128xf32, #tpu.memory_space<vmem>>, vector<8x128xf32>
    %c1_49 = arith.constant 1 : index
    %c0_50 = arith.constant 0 : index
    %47 = vector.load %arg15[%c1_49, %c0_50] : memref<10x128xf32, #tpu.memory_space<vmem>>, vector<8x128xf32>
    %c2_51 = arith.constant 2 : index
    %c0_52 = arith.constant 0 : index
    %48 = vector.load %arg15[%c2_51, %c0_52] : memref<10x128xf32, #tpu.memory_space<vmem>>, vector<8x128xf32>
    %49 = tpu.concatenate %46, %47, %48 in 1 : vector<8x128xf32>, vector<8x128xf32>, vector<8x128xf32> -> vector<8x384xf32>
    %c0_53 = arith.constant 0 : index
    %c0_54 = arith.constant 0 : index
    %50 = vector.load %arg8[%c0_53, %c0_54] : memref<384x128xf32, #tpu.memory_space<vmem>>, vector<384x128xf32>
    %cst_55 = arith.constant dense<0.000000e+00> : vector<8x128xf32>
    %51 = tpu.matmul %49, %50, %cst_55 {dimension_numbers = #tpu.dot_dimension_numbers<[1], [0], [0], [1], [0, 0, 1, 1], [], []>} : vector<8x384xf32>, vector<384x128xf32>, vector<8x128xf32> -> vector<8x128xf32>
    %c0_56 = arith.constant 0 : index
    %c0_57 = arith.constant 0 : index
    %52 = vector.load %arg9[%c0_56, %c0_57] : memref<1x128xf32, #tpu.memory_space<vmem>>, vector<1x128xf32>
    %53 = vector.broadcast %52 : vector<1x128xf32> to vector<8x128xf32>
    %54 = arith.addf %51, %53 : vector<8x128xf32>
    %cst_58 = arith.constant 0.000000e+00 : f32
    %55 = vector.broadcast %cst_58 : f32 to vector<8x128xf32>
    %56 = arith.cmpf ogt, %54, %55 : vector<8x128xf32>
    %cst_59 = arith.constant 2.000000e-01 : f32
    %57 = vector.broadcast %cst_59 : f32 to vector<8x128xf32>
    %58 = arith.mulf %57, %54 : vector<8x128xf32>
    %59 = arith.select %56, %54, %58 : vector<8x128xi1>, vector<8x128xf32>
    %c1_60 = arith.constant 1 : index
    %c0_61 = arith.constant 0 : index
    %60 = vector.load %arg15[%c1_60, %c0_61] : memref<10x128xf32, #tpu.memory_space<vmem>>, vector<8x128xf32>
    tpu.vector_store %arg15[%c1_60, %c0_61], %59 {strides = array<i32>} : memref<10x128xf32, #tpu.memory_space<vmem>>, vector<8x128xf32>,
    %c0_62 = arith.constant 0 : index
    %c0_63 = arith.constant 0 : index
    %61 = vector.load %arg15[%c0_62, %c0_63] : memref<10x128xf32, #tpu.memory_space<vmem>>, vector<8x128xf32>
    %c1_64 = arith.constant 1 : index
    %c0_65 = arith.constant 0 : index
    %62 = vector.load %arg15[%c1_64, %c0_65] : memref<10x128xf32, #tpu.memory_space<vmem>>, vector<8x128xf32>
    %c2_66 = arith.constant 2 : index
    %c0_67 = arith.constant 0 : index
    %63 = vector.load %arg15[%c2_66, %c0_67] : memref<10x128xf32, #tpu.memory_space<vmem>>, vector<8x128xf32>
    %64 = tpu.concatenate %61, %62, %63 in 1 : vector<8x128xf32>, vector<8x128xf32>, vector<8x128xf32> -> vector<8x384xf32>
    %c0_68 = arith.constant 0 : index
    %c0_69 = arith.constant 0 : index
    %65 = vector.load %arg10[%c0_68, %c0_69] : memref<384x128xf32, #tpu.memory_space<vmem>>, vector<384x128xf32>
    %cst_70 = arith.constant dense<0.000000e+00> : vector<8x128xf32>
    %66 = tpu.matmul %64, %65, %cst_70 {dimension_numbers = #tpu.dot_dimension_numbers<[1], [0], [0], [1], [0, 0, 1, 1], [], []>} : vector<8x384xf32>, vector<384x128xf32>, vector<8x128xf32> -> vector<8x128xf32>
    %c0_71 = arith.constant 0 : index
    %c0_72 = arith.constant 0 : index
    %67 = vector.load %arg11[%c0_71, %c0_72] : memref<1x128xf32, #tpu.memory_space<vmem>>, vector<1x128xf32>
    %68 = vector.broadcast %67 : vector<1x128xf32> to vector<8x128xf32>
    %69 = arith.addf %66, %68 : vector<8x128xf32>
    %cst_73 = arith.constant 0.000000e+00 : f32
    %70 = vector.broadcast %cst_73 : f32 to vector<8x128xf32>
    %71 = arith.cmpf ogt, %69, %70 : vector<8x128xf32>
    %cst_74 = arith.constant 2.000000e-01 : f32
    %72 = vector.broadcast %cst_74 : f32 to vector<8x128xf32>
    %73 = arith.mulf %72, %69 : vector<8x128xf32>
    %74 = arith.select %71, %69, %73 : vector<8x128xi1>, vector<8x128xf32>
    %c1_75 = arith.constant 1 : index
    %c0_76 = arith.constant 0 : index
    %75 = vector.load %arg15[%c1_75, %c0_76] : memref<10x128xf32, #tpu.memory_space<vmem>>, vector<8x128xf32>
    tpu.vector_store %arg15[%c1_75, %c0_76], %74 {strides = array<i32>} : memref<10x128xf32, #tpu.memory_space<vmem>>, vector<8x128xf32>,
    %c0_77 = arith.constant 0 : index
    %c0_78 = arith.constant 0 : index
    %76 = vector.load %arg15[%c0_77, %c0_78] : memref<10x128xf32, #tpu.memory_space<vmem>>, vector<8x128xf32>
    %c1_79 = arith.constant 1 : index
    %c0_80 = arith.constant 0 : index
    %77 = vector.load %arg15[%c1_79, %c0_80] : memref<10x128xf32, #tpu.memory_space<vmem>>, vector<8x128xf32>
    %c2_81 = arith.constant 2 : index
    %c0_82 = arith.constant 0 : index
    %78 = vector.load %arg15[%c2_81, %c0_82] : memref<10x128xf32, #tpu.memory_space<vmem>>, vector<8x128xf32>
    %79 = tpu.concatenate %76, %77, %78 in 1 : vector<8x128xf32>, vector<8x128xf32>, vector<8x128xf32> -> vector<8x384xf32>
    %c0_83 = arith.constant 0 : index
    %c0_84 = arith.constant 0 : index
    %80 = vector.load %arg12[%c0_83, %c0_84] : memref<384x128xf32, #tpu.memory_space<vmem>>, vector<384x128xf32>
    %cst_85 = arith.constant dense<0.000000e+00> : vector<8x128xf32>
    %81 = tpu.matmul %79, %80, %cst_85 {dimension_numbers = #tpu.dot_dimension_numbers<[1], [0], [0], [1], [0, 0, 1, 1], [], []>} : vector<8x384xf32>, vector<384x128xf32>, vector<8x128xf32> -> vector<8x128xf32>
    %c0_86 = arith.constant 0 : index
    %c0_87 = arith.constant 0 : index
    %82 = vector.load %arg13[%c0_86, %c0_87] : memref<1x128xf32, #tpu.memory_space<vmem>>, vector<1x128xf32>
    %83 = vector.broadcast %82 : vector<1x128xf32> to vector<8x128xf32>
    %84 = arith.addf %81, %83 : vector<8x128xf32>
    %85 = arith.addf %84, %59 : vector<8x128xf32>
    %c0_88 = arith.constant 0 : index
    %c0_89 = arith.constant 0 : index
    %c0_90 = arith.constant 0 : index
    %86 = vector.load %arg14[%c0_88, %c0_89, %c0_90] : memref<1x8x128xf32, #tpu.memory_space<vmem>>, vector<1x8x128xf32>
    %87 = vector.shape_cast %86 : vector<1x8x128xf32> to vector<8x128xf32>
    %88 = vector.shape_cast %85 : vector<8x128xf32> to vector<1x8x128xf32>
    tpu.vector_store %arg14[%c0_88, %c0_89, %c0_90], %88 {strides = array<i32>} : memref<1x8x128xf32, #tpu.memory_space<vmem>>, vector<1x8x128xf32>,
    return
  }
  func.func @transform_0(%arg0: i32) -> (i32, i32, i32) {
    %c0_i32 = arith.constant 0 : i32
    %c0_i32_0 = arith.constant 0 : i32
    %c0_i32_1 = arith.constant 0 : i32
    return %arg0, %c0_i32, %c0_i32_0 : i32, i32, i32
  }
  func.func @transform_1(%arg0: i32) -> (i32, i32) {
    %c0_i32 = arith.constant 0 : i32
    %c0_i32_0 = arith.constant 0 : i32
    %c0_i32_1 = arith.constant 0 : i32
    return %c0_i32, %c0_i32_0 : i32, i32
  }
  func.func @transform_2(%arg0: i32) -> (i32, i32) {
    %c0_i32 = arith.constant 0 : i32
    %c0_i32_0 = arith.constant 0 : i32
    %c0_i32_1 = arith.constant 0 : i32
    return %c0_i32, %c0_i32_0 : i32, i32
  }
  func.func @transform_3(%arg0: i32) -> (i32, i32) {
    %c0_i32 = arith.constant 0 : i32
    %c0_i32_0 = arith.constant 0 : i32
    %c0_i32_1 = arith.constant 0 : i32
    return %c0_i32, %c0_i32_0 : i32, i32
  }
  func.func @transform_4(%arg0: i32) -> (i32, i32) {
    %c0_i32 = arith.constant 0 : i32
    %c0_i32_0 = arith.constant 0 : i32
    %c0_i32_1 = arith.constant 0 : i32
    return %c0_i32, %c0_i32_0 : i32, i32
  }
  func.func @transform_5(%arg0: i32) -> (i32, i32) {
    %c0_i32 = arith.constant 0 : i32
    %c0_i32_0 = arith.constant 0 : i32
    %c0_i32_1 = arith.constant 0 : i32
    return %c0_i32, %c0_i32_0 : i32, i32
  }
  func.func @transform_6(%arg0: i32) -> (i32, i32) {
    %c0_i32 = arith.constant 0 : i32
    %c0_i32_0 = arith.constant 0 : i32
    %c0_i32_1 = arith.constant 0 : i32
    return %c0_i32, %c0_i32_0 : i32, i32
  }
  func.func @transform_7(%arg0: i32) -> (i32, i32) {
    %c0_i32 = arith.constant 0 : i32
    %c0_i32_0 = arith.constant 0 : i32
    %c0_i32_1 = arith.constant 0 : i32
    return %c0_i32, %c0_i32_0 : i32, i32
  }
  func.func @transform_8(%arg0: i32) -> (i32, i32) {
    %c0_i32 = arith.constant 0 : i32
    %c0_i32_0 = arith.constant 0 : i32
    %c0_i32_1 = arith.constant 0 : i32
    return %c0_i32, %c0_i32_0 : i32, i32
  }
  func.func @transform_9(%arg0: i32) -> (i32, i32) {
    %c0_i32 = arith.constant 0 : i32
    %c0_i32_0 = arith.constant 0 : i32
    %c0_i32_1 = arith.constant 0 : i32
    return %c0_i32, %c0_i32_0 : i32, i32
  }
  func.func @transform_10(%arg0: i32) -> (i32, i32) {
    %c0_i32 = arith.constant 0 : i32
    %c0_i32_0 = arith.constant 0 : i32
    %c0_i32_1 = arith.constant 0 : i32
    return %c0_i32, %c0_i32_0 : i32, i32
  }
  func.func @transform_11(%arg0: i32) -> (i32, i32) {
    %c0_i32 = arith.constant 0 : i32
    %c0_i32_0 = arith.constant 0 : i32
    %c0_i32_1 = arith.constant 0 : i32
    return %c0_i32, %c0_i32_0 : i32, i32
  }
  func.func @transform_12(%arg0: i32) -> (i32, i32) {
    %c0_i32 = arith.constant 0 : i32
    %c0_i32_0 = arith.constant 0 : i32
    %c0_i32_1 = arith.constant 0 : i32
    return %c0_i32, %c0_i32_0 : i32, i32
  }
  func.func @transform_13(%arg0: i32) -> (i32, i32, i32) {
    %c0_i32 = arith.constant 0 : i32
    %c0_i32_0 = arith.constant 0 : i32
    %c0_i32_1 = arith.constant 0 : i32
    return %arg0, %c0_i32, %c0_i32_0 : i32, i32, i32
  }
}

</mosaic_0001>

<bundles_post_ra>
// kernel: tpu_custom_call.1
= control target key start
LH: loop header
LB: loop body
LE: loop exit
PB: predicated region body
PF: predicated region fallthrough
CT: control target
= control target key end

     0   :  { %s3287_s0 = inlined_call_operand.hbm [shape: f32[2,8,128], index: 0, kind: input, shape index: {}]   ;;  %s3288_s1 = inlined_call_operand.hbm [shape: f32[384,128], index: 1, kind: input, shape index: {}]   ;;  %s3289_s2 = inlined_call_operand.vmem [shape: f32[1,128], index: 2, kind: input, shape index: {}]   ;;  %s3290_s3 = inlined_call_operand.hbm [shape: f32[384,128], index: 3, kind: input, shape index: {}]   ;;  %s3291_s4 = inlined_call_operand.vmem [shape: f32[1,128], index: 4, kind: input, shape index: {}]   ;;  %s3292_s5 = inlined_call_operand.hbm [shape: f32[384,128], index: 5, kind: input, shape index: {}]   ;;  %s3293_s6 = inlined_call_operand.vmem [shape: f32[1,128], index: 6, kind: input, shape index: {}]   ;;  %s3294_s7 = inlined_call_operand.hbm [shape: f32[384,128], index: 7, kind: input, shape index: {}]   ;;  %s3295_s8 = inlined_call_operand.vmem [shape: f32[1,128], index: 8, kind: input, shape index: {}]   ;;  %s3296_s9 = inlined_call_operand.hbm [shape: f32[384,128], index: 9, kind: input, shape index: {}]   ;;  %s3297_s10 = inlined_call_operand.vmem [shape: f32[1,128], index: 10, kind: input, shape index: {}]   ;;  %s3298_s11 = inlined_call_operand.hbm [shape: f32[384,128], index: 11, kind: input, shape index: {}]   ;;  %s3299_s12 = inlined_call_operand.vmem [shape: f32[1,128], index: 12, kind: input, shape index: {}]   ;;  %s3300_s13 = inlined_call_operand.hbm [shape: f32[2,8,128], index: 13, kind: output, shape index: {}]  }
   0x1   :  { %3306 = sst [smem:[#allocation23_spill]] %s3288_s1 }
   0x2   :  { %3307 = sst [smem:[#allocation24_spill]] %s3290_s3 }
   0x3   :  { %3308 = sst [smem:[#allocation25_spill]] %s3292_s5 }
   0x4   :  { %3309 = sst [smem:[#allocation26_spill]] %s3294_s7 }
   0x5   :  { %3310 = sst [smem:[#allocation27_spill]] %s3296_s9 }
   0x6   :  { %3311 = sst [smem:[#allocation28_spill]] %s3298_s11 }
   0x7   :  { %18 = vsyncpa [#allocation4], 0 }
   0x8   :  { %20 = vsyncpa [#allocation4 + $0x1], 0 }
   0x9   :  { %21 = vsyncpa [#allocation7], 0 }
   0xa   :  { %22 = vsyncpa [#allocation10], 0 }
   0xb   :  { %23 = vsyncpa [#allocation13], 0 }
   0xc   :  { %24 = vsyncpa [#allocation5], 0 }
   0xd   :  { %26 = vsyncpa [#allocation5 + $0x1], 0  ;;  %s2903_s25 = smov 0   ;;  %s2905_s26 = smov 0  }
   0xe   :  { %s2907_s27 = smov 0   ;;  %s2909_s28 = smov 0  }
   0xf LB: > { %3312 = sst [smem:[#allocation21_spill]] %s2815_s27  ;;  %s2821_s29 = smov [#allocation6]   ;;  %s2819_s28 = sphi %s2909_s28, %s3343_s28   ;;  %s2815_s27 = sphi %s2907_s27, %s3340_s27   ;;  %s2811_s26 = sphi %s2905_s26, %s3342_s26   ;;  %s2807_s25 = sphi %s2903_s25, %s3341_s25  }
  0x10   : > { %s353_s30 = sshll.u32 %s2821_s29, 4  ;;  %s2924_s14 = sadd.s32 4294967295, %s2819_s28   ;;  %s354_s30 = int_to_ptr.vmem [resolvable:$true] %s353_s30 }
  0x11   : > { %p1897_p0 = scmp.ge.s32.totalorder %s2819_s28, 1  ;;  %p3301_p1 = scmp.eq.s32.totalorder %s2924_s14, 0 }
  0x12   : > { %p341_p2 = scmp.lt.s32.totalorder %s2819_s28, 3  ;;  %s2822_s16 = smov [#allocation9]  }
  0x13   : > { %s385_s17 = sshll.u32 %s2822_s16, 4  ;;  %s2823_s19 = smov [#allocation12]   ;;  %s2942_s17 = int_to_ptr.vmem [resolvable:$true] %s385_s17 }
  0x14   : > { %p2929_p3 = pnand %p1897_p0, %p341_p2  ;;  %s417_s20 = sshll.u32 %s2823_s19, 4  ;;  %s2944_s20 = int_to_ptr.vmem [resolvable:$true] %s417_s20 }
  0x15   : > { %s2570_s22 = scalar_lea.vmem %s354_s30, 6144  ;;  %p2578_p11 = scmp.lt.s32.totalorder %s354_s30, %s354_s30 }
  0x16   : > { %s3313_s15 = scalar_select %p2929_p3, 1, 0 }
  0x17   : > { %p2476_p5 = pneg %p2929_p3  ;;  %p2571_p8 = scmp.ne.s32.totalorder %s354_s30, %s2570_s22 }
  0x18   : > { %p2579_p12 = scmp.lt.s32.totalorder %s2570_s22, %s2570_s22 }
  0x19   : > { %p2938_p6 = pnand %p2476_p5, %p3301_p1 }
  0x1a   : > { %p2580_p13 = por %p2579_p12, %p2578_p11 }
  0x1b   : > { %p2948_p7 = pneg %p2938_p6 }
  0x1d   : > { %p2573_p9 = pnand %p2571_p8, %p2948_p7 }
  0x1f   : > { %p2574_p10 = pneg %p2573_p9 }
  0x21   : > { %p2581_p0 = pnand %p2580_p13, %p2574_p10 }
  0x23   : > { %2584 = shalt.err (!%p2581_p0)
}
  0x24   : > { %s2824_s23 = smov 128   ;;  %s2825_s24 = smov 8  }
  0x25   : > { %s3316_s1 = sld [smem:[#allocation23_spill]]  ;;  %s2596_s19 = scalar_lea.vmem %s2942_s17, 6144 }
  0x26   : > { %p2597_p2 = scmp.ne.s32.totalorder %s2942_s17, %s2596_s19  ;;  %p2604_p9 = scmp.lt.s32.totalorder %s2942_s17, %s2942_s17 }
  0x27   : > { %p2605_p10 = scmp.lt.s32.totalorder %s2596_s19, %s2596_s19 }
  0x28   : > { %p2599_p5 = pnand %p2597_p2, %p2948_p7 }
  0x29   : > { %p2606_p11 = por %p2605_p10, %p2604_p9 }
  0x2a   : > { %p2600_p8 = pneg %p2599_p5 }
  0x2b   : > { %2479 = dma.hbm_to_vmem [thread:$0]  (!%p2938_p6), %s3316_s1, 6144, %s354_s30, [#allocation7], %s2824_s23, %s2824_s23, %s2825_s24  }
  0x2c   : > { %p2607_p12 = pnand %p2606_p11, %p2600_p8 }
  0x2e   : > { %2610 = shalt.err (!%p2607_p12)
}
  0x2f   : > { %s3317_s5 = sld [smem:[#allocation25_spill]]  ;;  %s2622_s30 = scalar_lea.vmem %s2944_s20, 6144 }
  0x30   : > { %p2623_p13 = scmp.ne.s32.totalorder %s2944_s20, %s2622_s30  ;;  %p2630_p5 = scmp.lt.s32.totalorder %s2944_s20, %s2944_s20 }
  0x31   : > { %p2631_p8 = scmp.lt.s32.totalorder %s2622_s30, %s2622_s30 }
  0x32   : > { %p2625_p0 = pnand %p2623_p13, %p2948_p7 }
  0x33   : > { %p2632_p9 = por %p2631_p8, %p2630_p5 }
  0x34   : > { %p2626_p2 = pneg %p2625_p0 }
  0x35   : > { %2485 = dma.hbm_to_vmem [thread:$0]  (!%p2938_p6), %s3317_s5, 6144, %s2942_s17, [#allocation10], %s2824_s23, %s2824_s23, %s2825_s24  }
  0x36   : > { %p2633_p10 = pnand %p2632_p9, %p2626_p2 }
  0x38   : > { %2636 = shalt.err (!%p2633_p10)
}
  0x39   : > { %s3318_s9 = sld [smem:[#allocation27_spill]]  ;;  %s2826_s17 = smov [#allocation8]  }
  0x3a   : > { %s369_s22 = sshll.u32 %s2826_s17, 4  ;;  %s2827_s29 = smov [#allocation11]   ;;  %s370_s22 = int_to_ptr.vmem [resolvable:$true] %s369_s22 }
  0x3b   : > { %s401_s1 = sshll.u32 %s2827_s29, 4  ;;  %s2648_s30 = scalar_lea.vmem %s370_s22, 6144  ;;  %s402_s1 = int_to_ptr.vmem [resolvable:$true] %s401_s1 }
  0x3c   : > { %p2649_p11 = scmp.ne.s32.totalorder %s370_s22, %s2648_s30  ;;  %p2656_p0 = scmp.lt.s32.totalorder %s370_s22, %s370_s22 }
  0x3d   : > { %p2657_p2 = scmp.lt.s32.totalorder %s2648_s30, %s2648_s30 }
  0x3e   : > { %p2651_p12 = pnand %p2649_p11, %p2948_p7 }
  0x3f   : > { %2491 = dma.hbm_to_vmem [thread:$0]  (!%p2938_p6), %s3318_s9, 6144, %s2944_s20, [#allocation13], %s2824_s23, %s2824_s23, %s2825_s24  }
  0x40   : > { %p2652_p13 = pneg %p2651_p12  ;;  %p2658_p5 = por %p2657_p2, %p2656_p0 }
  0x42   : > { %p2659_p8 = pnand %p2658_p5, %p2652_p13 }
  0x44   : > { %2662 = shalt.err (!%p2659_p8)
}
  0x45   : > { %s3319_s3 = sld [smem:[#allocation24_spill]]  ;;  %s2674_s19 = scalar_lea.vmem %s402_s1, 6144 }
  0x46   : > { %p2675_p9 = scmp.ne.s32.totalorder %s402_s1, %s2674_s19  ;;  %p2682_p12 = scmp.lt.s32.totalorder %s402_s1, %s402_s1 }
  0x47   : > { %p2683_p0 = scmp.lt.s32.totalorder %s2674_s19, %s2674_s19 }
  0x48   : > { %p2677_p10 = pnand %p2675_p9, %p2948_p7 }
  0x49   : > { %p2684_p13 = por %p2683_p0, %p2682_p12 }
  0x4a   : > { %p2678_p11 = pneg %p2677_p10 }
  0x4b   : > { %2482 = dma.hbm_to_vmem [thread:$0]  (!%p2938_p6), %s3319_s3, 6144, %s370_s22, [#allocation7], %s2824_s23, %s2824_s23, %s2825_s24  }
  0x4c   : > { %p2685_p2 = pnand %p2684_p13, %p2678_p11 }
  0x4e   : > { %2688 = shalt.err (!%p2685_p2)
}
  0x4f   : > { %s3320_s7 = sld [smem:[#allocation26_spill]]  ;;  %s2828_s22 = smov [#allocation14]  }
  0x50   : > { %s433_s30 = sshll.u32 %s2828_s22, 4  ;;  %s434_s30 = int_to_ptr.vmem [resolvable:$true] %s433_s30 }
  0x51   : > { %s2700_s20 = scalar_lea.vmem %s434_s30, 6144  ;;  %p2708_p10 = scmp.lt.s32.totalorder %s434_s30, %s434_s30 }
  0x52   : > { %p2701_p5 = scmp.ne.s32.totalorder %s434_s30, %s2700_s20  ;;  %p2709_p11 = scmp.lt.s32.totalorder %s2700_s20, %s2700_s20 }
  0x54   : > { %p2703_p8 = pnand %p2701_p5, %p2948_p7  ;;  %p2710_p12 = por %p2709_p11, %p2708_p10 }
  0x55   : > { %2488 = dma.hbm_to_vmem [thread:$0]  (!%p2938_p6), %s3320_s7, 6144, %s402_s1, [#allocation10], %s2824_s23, %s2824_s23, %s2825_s24  }
  0x56   : > { %p2704_p9 = pneg %p2703_p8 }
  0x58   : > { %p2711_p0 = pnand %p2710_p12, %p2704_p9 }
  0x5a   : > { %2714 = shalt.err (!%p2711_p0)
}
  0x5b   : > { %s3321_s11 = sld [smem:[#allocation28_spill]]  ;;  %s1896_s18 = sadd.s32 4294967294, %s2819_s28  }
  0x5c   : > { %s3024_s21 = sadd.s32 1, %s2819_s28   ;;  %s39_s17 = sadd.s32 1, %s2815_s27 }
  0x5d   : > { %s36_s19 = ssub.s32 %s2819_s28, %s3024_s21  ;;  %p46_p13 = scmp.ne.s32.totalorder %s2815_s27, %s2811_s26 }
  0x5e   : > { %p37_p7 = scmp.eq.s32.totalorder %s36_s19, 0  ;;  %p47_p2 = scmp.eq.s32.totalorder %s2819_s28, 0 }
  0x5f   : > { %p52_p5 = scmp.ne.s32.totalorder %s2811_s26, %s2807_s25  ;;  %p328_p9 = scmp.eq.s32.totalorder %s2924_s14, 1 }
  0x60   : > { %s3035_s29 = scalar_select %p37_p7, %s2815_s27, %s39_s17  }
  0x61   : > { %2494 = dma.hbm_to_vmem [thread:$0]  (!%p2938_p6), %s3321_s11, 6144, %s434_s30, [#allocation13], %s2824_s23, %s2824_s23, %s2825_s24  }
  0x62   : > { %3322 = sst [smem:[#allocation22_spill]] %s3035_s29  ;;  %p3037_p8 = por %p47_p2, %p46_p13 }
  0x63   : > { %p3043_p6 = por %p3301_p1, %p52_p5  ;;  %p334_p10 = scmp.eq.s32.totalorder %s1896_s18, 1 }
  0x64   : > { %p2509_p11 = scmp.lt.s32.totalorder %s2819_s28, 2  ;;  %s450_s24 = sand.u32 1, %s2815_s27  }
  0x65   : > { %s3324_s23 = scalar_select %p3043_p6, 1, 0 }
  0x66   : > { %p3050_p12 = por %p328_p9, %p46_p13  ;;  %p3054_p0 = por %p334_p10, %p52_p5 }
  0x67   : > { %s1905_s16 = sshll.u32 %s450_s24, 3  ;;  %s1906_s1 = sshll.u32 %s2819_s28, 7 }
  0x68   : > { %s3325_s30 = scalar_select %p3050_p12, 1, 0 }
  0x69   : > { %s3326_s20 = scalar_select %p3054_p0, 1, 0 }
  0x6a   : > { %s3062_s3 = scalar_lea.hbm %s3287_s0, %s1906_s1  ;;  %s454_s18 = scalar_lea.vmem [#allocation3], %s1905_s16 }
  0x6b   : > { %s461_s5 = sshll.u32 %s454_s18, 4  ;;  %p3066_p7 = pnand %p2509_p11, %p3037_p8  ;;  %s462_s5 = int_to_ptr.vmem [resolvable:$true] %s461_s5 }
  0x6c   : > { %s451_s9 = scalar_lea.sflag [#allocation4], %s450_s24  ;;  %s2715_s11 = scalar_lea.hbm %s3062_s3, 128 }
  0x6d   : > { %p2716_p13 = scmp.ne.s32.totalorder %s3062_s3, %s2715_s11  ;;  %p2717_p2 = pneg %p3066_p7 }
  0x6e   : > { %s2720_s17 = scalar_lea.hbm %s3287_s0, 256  ;;  %p2721_p10 = scmp.lt.s32.totalorder %s3062_s3, %s3287_s0 }
  0x6f   : > { %p2718_p5 = pnand %p2717_p2, %p2716_p13  ;;  %p2722_p8 = scmp.lt.s32.totalorder %s2720_s17, %s2715_s11 }
  0x71   : > { %p2719_p9 = pneg %p2718_p5  ;;  %p2723_p11 = por %p2722_p8, %p2721_p10 }
  0x73   : > { %p2724_p4 = pnand %p2723_p11, %p2719_p9 }
  0x75   : > { %2727 = shalt.err (!%p2724_p4)
}
  0x76   : > { %s2728_s22 = scalar_lea.vmem %s462_s5, 128  ;;  %s2829_s24 = smov [#allocation3]  }
  0x77   : > { %p2729_p1 = scmp.ne.s32.totalorder %s462_s5, %s2728_s22  ;;  %s2733_s29 = sshll.u32 %s2829_s24, 4  ;;  %s2734_s29 = int_to_ptr.vmem [resolvable:$false] %s2733_s29 }
  0x78   : > { %s2735_s27 = scalar_lea.vmem %s2734_s29, 256  ;;  %p2736_p13 = scmp.lt.s32.totalorder %s462_s5, %s2734_s29 }
  0x79   : > { %p2731_p0 = pnand %p2729_p1, %p2717_p2  ;;  %p2737_p5 = scmp.lt.s32.totalorder %s2735_s27, %s2728_s22 }
  0x7b   : > { %p2732_p12 = pneg %p2731_p0  ;;  %p2738_p6 = por %p2737_p5, %p2736_p13 }
  0x7d   : > { %p2739_p3 = pnand %p2738_p6, %p2732_p12 }
  0x7f   : > { %2742 = shalt.err (!%p2739_p3)
}
  0x80   : > { %2498 = dma.hbm_to_vmem [thread:$0]  (!%p3066_p7), %s3062_s3, 128, %s462_s5, %s451_s9  }
  0x81   : > { %p3328_p9 = scmp.ne.s32.totalorder %s3313_s15, 0 }
  0x82   : > { %s3087_s11 = sand.u32 (!%p3328_p9), 1, %s2811_s26   ;;  %p3329_p1 = scmp.ne.s32.totalorder (!%p3328_p9), %s3324_s23, 0 }
  0x83   : > { %470 = sbr.rel (%p3328_p9) target bundleno = 1460 (0x5b4), region = 72  ;;  %s1908_s1 = sshll.u32 (!%p3328_p9), %s3087_s11, 3 }
  0x84   : > { %s473_s29 = scalar_lea.sflag (!%p3328_p9), [#allocation4], %s3087_s11  ;;  %s3093_s27 = scalar_lea.vmem (!%p3328_p9), [#allocation3], %s1908_s1 }
  0x88   : > { %2786 = dma.done.wait (%p3329_p1), %s473_s29, 128  }
  0x89   : > { %2788 = vsyncadd (%p3329_p1), %s473_s29, 4294967168  ;;  %p3330_p3 = scmp.eq.s32.totalorder %s2924_s14, 0 }
  0x8b   : > { %2790 = dma.done.wait (%p3330_p3), [#allocation7], 12288   ;;  %p3331_p4 = pmov %p3330_p3 }
  0x8c   : > { %p3332_p6 = pmov %p3330_p3 }
  0x8d   : > { %2792 = vsyncadd (%p3331_p4), [#allocation7], 4294955008 }
  0x8e   : > { %2794 = dma.done.wait (%p3332_p6), [#allocation10], 12288   ;;  %p3333_p12 = pmov %p3330_p3 }
  0x8f   : > { %p3334_p0 = pmov %p3330_p3 }
  0x90   : > { %2796 = vsyncadd (%p3333_p12), [#allocation10], 4294955008 }
  0x91   : > { %2798 = dma.done.wait (%p3334_p0), [#allocation13], 12288   ;;  %p3335_p7 = pmov %p3334_p0 }
  0x92   : > { %v2830_v0 = vmov 0.0   ;;  %vm2831_vm0 = vmmov 0   ;;  %v581_v1 = vld [vmem:[#allocation6 + $0xf8] sm:$0xff]  ;;  %v580_v3 = vld [vmem:[#allocation6 + $0xf0] sm:$0xff]  ;;  %v579_v5 = vld [vmem:[#allocation6 + $0xe8] sm:$0xff]  ;;  %s1923_s29 = sshll.u32 %s2924_s14, 7 }
  0x93   : > { %2800 = vsyncadd (%p3335_p7), [#allocation13], 4294955008  ;;  %2238 = vmatprep.subr.mxu1 %v2830_v0  ;;  %543 = vst [vmem:[#allocation2] sm:$0xff] %v2830_v0  ;;  %2270 = vmatprep.mubr.msk.f32.mxu1 %vm2831_vm0, %v2830_v0  ;;  %v565_v2 = vld [vmem:[#allocation6 + $0x78] sm:$0xff]  ;;  %v564_v4 = vld [vmem:[#allocation6 + $0x70] sm:$0xff]  ;;  %s1767_s9 = scalar_lea.hbm %s3300_s13, %s1923_s29  ;;  %s1756_s15 = scalar_lea.sflag [#allocation5], %s3087_s11 }
  0x94   : > { %544 = vst [vmem:[#allocation2 + $0x8] sm:$0x3] %v2830_v0  ;;  %1926 = vmatprep.subr.mxu0 %v581_v1  ;;  %v597_v6 = vld [vmem:[#allocation6 + $0x178] sm:$0xff]  ;;  %v563_v7 = vld [vmem:[#allocation6 + $0x68] sm:$0xff]  ;;  %v596_v8 = vld [vmem:[#allocation6 + $0x170] sm:$0xff]  ;;  %p3336_p10 = scmp.ne.s32.totalorder %s3325_s30, 0 }
  0x95   : > { %1927 = vmatpush3.msra.mxu0 %v565_v2  ;;  %2239 = vmatpush3.msra.mxu1 %v597_v6  ;;  %v578_v9 = vld [vmem:[#allocation6 + $0xe0] sm:$0xff]  ;;  %v595_v10 = vld [vmem:[#allocation6 + $0x168] sm:$0xff]  ;;  %v577_v12 = vld [vmem:[#allocation6 + $0xd8] sm:$0xff]  ;;  %s2832_s19 = smov [#allocation15]  }
  0x96   : > { %1928 = vmatprep.subr.mxu0 %v580_v3  ;;  %2240 = vmatprep.subr.mxu1 %v2830_v0  ;;  %v562_v11 = vld [vmem:[#allocation6 + $0x60] sm:$0xff]  ;;  %v561_v14 = vld [vmem:[#allocation6 + $0x58] sm:$0xff]  ;;  %v576_v15 = vld [vmem:[#allocation6 + $0xd0] sm:$0xff]  ;;  %s2747_s14 = sshll.u32 %s2832_s19, 4  ;;  %s2748_s14 = int_to_ptr.vmem [resolvable:$false] %s2747_s14 }
  0x97   : > { %1929 = vmatpush3.msra.mxu0 %v564_v4  ;;  %2241 = vmatpush3.msra.mxu1 %v596_v8  ;;  %v594_v13 = vld [vmem:[#allocation6 + $0x160] sm:$0xff]  ;;  %v593_v16 = vld [vmem:[#allocation6 + $0x158] sm:$0xff]  ;;  %v560_v17 = vld [vmem:[#allocation6 + $0x50] sm:$0xff] }
  0x98   : > { %1930 = vmatprep.subr.mxu0 %v579_v5  ;;  %2242 = vmatprep.subr.mxu1 %v2830_v0  ;;  %v575_v18 = vld [vmem:[#allocation6 + $0xc8] sm:$0xff]  ;;  %v592_v19 = vld [vmem:[#allocation6 + $0x150] sm:$0xff]  ;;  %v574_v21 = vld [vmem:[#allocation6 + $0xc0] sm:$0xff] }
  0x99   : > { %1931 = vmatpush3.msra.mxu0 %v563_v7  ;;  %2243 = vmatpush3.msra.mxu1 %v595_v10  ;;  %v559_v20 = vld [vmem:[#allocation6 + $0x48] sm:$0xff]  ;;  %v558_v23 = vld [vmem:[#allocation6 + $0x40] sm:$0xff]  ;;  %v573_v24 = vld [vmem:[#allocation6 + $0xb8] sm:$0xff] }
  0x9a   : > { %1932 = vmatprep.subr.mxu0 %v578_v9  ;;  %2244 = vmatprep.subr.mxu1 %v2830_v0  ;;  %v591_v22 = vld [vmem:[#allocation6 + $0x148] sm:$0xff]  ;;  %v590_v25 = vld [vmem:[#allocation6 + $0x140] sm:$0xff]  ;;  %v557_v26 = vld [vmem:[#allocation6 + $0x38] sm:$0xff] }
  0x9b   : > { %1933 = vmatpush3.msra.mxu0 %v562_v11  ;;  %2245 = vmatpush3.msra.mxu1 %v594_v13  ;;  %v545_v27 = vld [vmem:[%s3093_s27] sm:$0xff]  ;;  %v571_v31 = vld [vmem:[#allocation6 + $0xa8] sm:$0xff]  ;;  %v570_v34 = vld [vmem:[#allocation6 + $0xa0] sm:$0xff]  ;;  %s542_s27 = scalar_lea.vmem [#allocation15], %s1908_s1  ;;  %s2749_s1 = scalar_lea.vmem %s2748_s14, 256 }
  0x9c   : > { %1934 = vmatprep.subr.mxu0 %v577_v12  ;;  %2246 = vmatprep.subr.mxu1 %v2830_v0  ;;  %v572_v28 = vld [vmem:[#allocation6 + $0xb0] sm:$0xff]  ;;  %v589_v29 = vld [vmem:[#allocation6 + $0x138] sm:$0xff]  ;;  %546 = vst [vmem:[#allocation2 + $0x1] sm:$0xff] %v545_v27  ;;  %v555_v33 = vld [vmem:[#allocation6 + $0x28] sm:$0xff]  ;;  %s1769_s3 = sshll.u32 %s542_s27, 4  ;;  %s1770_s3 = int_to_ptr.vmem [resolvable:$true] %s1769_s3 }
  0x9d   : > { %1935 = vmatpush3.msra.mxu0 %v561_v14  ;;  %2247 = vmatpush3.msra.mxu1 %v593_v16  ;;  %v556_v30 = vld [vmem:[#allocation6 + $0x30] sm:$0xff]  ;;  %v587_v35 = vld [vmem:[#allocation6 + $0x128] sm:$0xff]  ;;  %v554_v36 = vld [vmem:[#allocation6 + $0x20] sm:$0xff]  ;;  %s2743_s23 = scalar_lea.vmem %s1770_s3, 128  ;;  %p2750_p13 = scmp.lt.s32.totalorder %s1770_s3, %s2748_s14 }
  0x9e   : > { %1936 = vmatprep.subr.mxu0 %v576_v15  ;;  %2248 = vmatprep.subr.mxu1 %v2830_v0  ;;  %v588_v32 = vld [vmem:[#allocation6 + $0x130] sm:$0xff]  ;;  %v569_v37 = vld [vmem:[#allocation6 + $0x98] sm:$0xff]  ;;  %v586_v38 = vld [vmem:[#allocation6 + $0x120] sm:$0xff]  ;;  %p2744_p2 = scmp.ne.s32.totalorder %s1770_s3, %s2743_s23  ;;  %p2751_p5 = scmp.lt.s32.totalorder %s2749_s1, %s2743_s23 }
  0x9f   : > { %1937 = vmatpush3.msra.mxu0 %v560_v17  ;;  %2249 = vmatpush3.msra.mxu1 %v592_v19  ;;  %v553_v39 = vld [vmem:[#allocation6 + $0x18] sm:$0xff]  ;;  %v568_v40 = vld [vmem:[#allocation6 + $0x90] sm:$0xff]  ;;  %v567_v43 = vld [vmem:[#allocation6 + $0x88] sm:$0xff] }
  0xa0   : > { %1938 = vmatprep.subr.mxu0 %v575_v18  ;;  %2250 = vmatprep.subr.mxu1 %v2830_v0  ;;  %v585_v41 = vld [vmem:[#allocation6 + $0x118] sm:$0xff]  ;;  %v552_v42 = vld [vmem:[#allocation6 + $0x10] sm:$0xff]  ;;  %v551_v44 = vld [vmem:[#allocation6 + $0x8] sm:$0xff]  ;;  %p2745_p8 = pnand %p2744_p2, %p3336_p10  ;;  %p2752_p9 = por %p2751_p5, %p2750_p13 }
  0xa1   : > { %1939 = vmatpush3.msra.mxu0 %v559_v20  ;;  %2251 = vmatpush3.msra.mxu1 %v591_v22  ;;  %v584_v45 = vld [vmem:[#allocation6 + $0x110] sm:$0xff]  ;;  %v566_v46 = vld [vmem:[#allocation6 + $0x80] sm:$0xff]  ;;  %v583_v48 = vld [vmem:[#allocation6 + $0x108] sm:$0xff] }
  0xa2   : > { %1940 = vmatprep.subr.mxu0 %v574_v21  ;;  %2252 = vmatprep.subr.mxu1 %v2830_v0  ;;  %v550_v47 = vld [vmem:[#allocation6] sm:$0xff]  ;;  %v783_v51 = vld [vmem:[#allocation8 + $0xf8] sm:$0xff]  ;;  %v782_v55 = vld [vmem:[#allocation8 + $0xf0] sm:$0xff]  ;;  %p2746_p11 = pneg %p2745_p8 }
  0xa3   : > { %1941 = vmatpush3.msra.mxu0 %v558_v23  ;;  %2253 = vmatpush3.msra.mxu1 %v590_v25  ;;  %v547_v49 = vld [vmem:[#allocation2] sm:$0xff]  ;;  %v799_v53 = vld [vmem:[#allocation8 + $0x178] sm:$0xff]  ;;  %v798_v56 = vld [vmem:[#allocation8 + $0x170] sm:$0xff] }
  0xa4   : > { %1942 = vmatprep.subr.mxu0 %v573_v24  ;;  %2254 = vmatprep.subr.mxu1 %v2830_v0  ;;  %v582_v50 = vld [vmem:[#allocation6 + $0x100] sm:$0xff]  ;;  %v767_v54 = vld [vmem:[#allocation8 + $0x78] sm:$0xff]  ;;  %v766_v57 = vld [vmem:[#allocation8 + $0x70] sm:$0xff]  ;;  %p2753_p1 = pnand %p2752_p9, %p2746_p11 }
  0xa5   : > { %1943 = vmatpush3.msra.mxu0 %v557_v26  ;;  %2255 = vmatpush3.msra.mxu1 %v589_v29  ;;  %v549_v52 = vld [vmem:[#allocation2 + $0x2] sm:$0xff]  ;;  %v779_v1 = vld [vmem:[#allocation8 + $0xd8] sm:$0xff]  ;;  %v778_v4 = vld [vmem:[#allocation8 + $0xd0] sm:$0xff] }
  0xa6   : > { %1944 = vmatprep.subr.mxu0 %v572_v28  ;;  %2256 = vmatprep.subr.mxu1 %v2830_v0  ;;  %v781_v58 = vld [vmem:[#allocation8 + $0xe8] sm:$0xff]  ;;  %v780_v61 = vld [vmem:[#allocation8 + $0xe0] sm:$0xff]  ;;  %v795_v2 = vld [vmem:[#allocation8 + $0x158] sm:$0xff] }
  0xa7   : > { %1945 = vmatpush3.msra.mxu0 %v556_v30  ;;  %2257 = vmatpush3.msra.mxu1 %v588_v32  ;;  %v797_v59 = vld [vmem:[#allocation8 + $0x168] sm:$0xff]  ;;  %v796_v62 = vld [vmem:[#allocation8 + $0x160] sm:$0xff]  ;;  %v763_v3 = vld [vmem:[#allocation8 + $0x58] sm:$0xff] }
  0xa8   : > { %1946 = vmatprep.subr.mxu0 %v571_v31  ;;  %2258 = vmatprep.subr.mxu1 %v2830_v0  ;;  %v765_v60 = vld [vmem:[#allocation8 + $0x68] sm:$0xff]  ;;  %v764_v63 = vld [vmem:[#allocation8 + $0x60] sm:$0xff]  ;;  %v794_v5 = vld [vmem:[#allocation8 + $0x150] sm:$0xff] }
  0xa9   : > { %1947 = vmatpush3.msra.mxu0 %v555_v33  ;;  %2259 = vmatpush3.msra.mxu1 %v587_v35  ;;  %v762_v6 = vld [vmem:[#allocation8 + $0x50] sm:$0xff]  ;;  %v777_v7 = vld [vmem:[#allocation8 + $0xc8] sm:$0xff]  ;;  %v776_v10 = vld [vmem:[#allocation8 + $0xc0] sm:$0xff] }
  0xaa   : > { %1948 = vmatprep.subr.mxu0 %v570_v34  ;;  %2260 = vmatprep.subr.mxu1 %v2830_v0  ;;  %v793_v8 = vld [vmem:[#allocation8 + $0x148] sm:$0xff]  ;;  %v792_v11 = vld [vmem:[#allocation8 + $0x140] sm:$0xff]  ;;  %v775_v13 = vld [vmem:[#allocation8 + $0xb8] sm:$0xff] }
  0xab   : > { %1949 = vmatpush3.msra.mxu0 %v554_v36  ;;  %2261 = vmatpush3.msra.mxu1 %v586_v38  ;;  %v761_v9 = vld [vmem:[#allocation8 + $0x48] sm:$0xff]  ;;  %v760_v12 = vld [vmem:[#allocation8 + $0x40] sm:$0xff]  ;;  %v791_v14 = vld [vmem:[#allocation8 + $0x138] sm:$0xff] }
  0xac   : > { %1950 = vmatprep.subr.mxu0 %v569_v37  ;;  %2262 = vmatprep.subr.mxu1 %v2830_v0  ;;  %v759_v15 = vld [vmem:[#allocation8 + $0x38] sm:$0xff]  ;;  %v774_v16 = vld [vmem:[#allocation8 + $0xb0] sm:$0xff]  ;;  %v773_v19 = vld [vmem:[#allocation8 + $0xa8] sm:$0xff] }
  0xad   : > { %1951 = vmatpush3.msra.mxu0 %v553_v39  ;;  %2263 = vmatpush3.msra.mxu1 %v585_v41  ;;  %v790_v17 = vld [vmem:[#allocation8 + $0x130] sm:$0xff]  ;;  %v789_v20 = vld [vmem:[#allocation8 + $0x128] sm:$0xff]  ;;  %v772_v22 = vld [vmem:[#allocation8 + $0xa0] sm:$0xff] }
  0xae   : > { %1952 = vmatprep.subr.mxu0 %v568_v40  ;;  %2264 = vmatprep.subr.mxu1 %v2830_v0  ;;  %v758_v18 = vld [vmem:[#allocation8 + $0x30] sm:$0xff]  ;;  %v757_v21 = vld [vmem:[#allocation8 + $0x28] sm:$0xff]  ;;  %v788_v23 = vld [vmem:[#allocation8 + $0x120] sm:$0xff] }
  0xaf   : > { %1953 = vmatpush3.msra.mxu0 %v552_v42  ;;  %669 = vmatprep.mubr.f32.mxu0 %v545_v27  ;;  %v756_v24 = vld [vmem:[#allocation8 + $0x20] sm:$0xff]  ;;  %v771_v25 = vld [vmem:[#allocation8 + $0x98] sm:$0xff]  ;;  %v770_v28 = vld [vmem:[#allocation8 + $0x90] sm:$0xff] }
  0xb0   : > { %1954 = vmatprep.subr.mxu0 %v567_v43  ;;  %2265 = vmatpush3.msra.mxu1 %v584_v45  ;;  %v787_v26 = vld [vmem:[#allocation8 + $0x118] sm:$0xff]  ;;  %v786_v29 = vld [vmem:[#allocation8 + $0x110] sm:$0xff]  ;;  %v769_v31 = vld [vmem:[#allocation8 + $0x88] sm:$0xff] }
  0xb1   : > { %1955 = vmatpush3.msra.mxu0 %v551_v44  ;;  %2266 = vmatprep.subr.mxu1 %v2830_v0  ;;  %v755_v27 = vld [vmem:[#allocation8 + $0x18] sm:$0xff]  ;;  %v754_v30 = vld [vmem:[#allocation8 + $0x10] sm:$0xff]  ;;  %v785_v32 = vld [vmem:[#allocation8 + $0x108] sm:$0xff] }
  0xb2   : > { %1956 = vmatprep.subr.mxu0 %v566_v46  ;;  %2267 = vmatpush3.msra.mxu1 %v583_v48  ;;  %v753_v33 = vld [vmem:[#allocation8 + $0x8] sm:$0xff]  ;;  %v768_v34 = vld [vmem:[#allocation8 + $0x80] sm:$0xff]  ;;  %v985_v37 = vld [vmem:[#allocation9 + $0xf8] sm:$0xff] }
  0xb3   : > { %1957 = vmatpush3.msra.mxu0 %v550_v47  ;;  %2268 = vmatprep.subr.mxu1 %v2830_v0  ;;  %v784_v35 = vld [vmem:[#allocation8 + $0x100] sm:$0xff]  ;;  %v1001_v48 = vld [vmem:[#allocation9 + $0x178] sm:$0xff] }
  0xb4   : > { %670 = vmatmul.mubr.f32.vlgmr.msra.gmra.mxu0 %v547_v49  ;;  %2269 = vmatpush3.msra.mxu1 %v582_v50  ;;  %v752_v36 = vld [vmem:[#allocation8] sm:$0xff]  ;;  %v969_v49 = vld [vmem:[#allocation9 + $0x78] sm:$0xff] }
  0xb5   : > { %1978 = vmatprep.subr.mxu0 %v783_v51  ;;  %2271 = vmatmul.mubr.f32.vlgmr.msra.gmra.mxu1 %v549_v52  ;;  %v1916_v40 = vld [vmem:[%s3289_s2] ss:$0 sm:$0xff]  ;;  %v984_v52 = vld [vmem:[#allocation9 + $0xf0] sm:$0xff] }
  0xb6   : > { %2273 = vmatprep.subr.mxu1 %v2830_v0  ;;  %1979 = vmatpush3.msra.mxu0 %v767_v54  ;;  %v968_v54 = vld [vmem:[#allocation9 + $0x70] sm:$0xff] }
  0xb7   : > { %2274 = vmatpush3.msra.mxu1 %v799_v53  ;;  %1980 = vmatprep.subr.mxu0 %v782_v55  ;;  %v1000_v53 = vld [vmem:[#allocation9 + $0x170] sm:$0xff]  ;;  %v983_v55 = vld [vmem:[#allocation9 + $0xe8] sm:$0xff] }
  0xb8   : > { %2275 = vmatprep.subr.mxu1 %v2830_v0  ;;  %1981 = vmatpush3.msra.mxu0 %v766_v57  ;;  %v967_v57 = vld [vmem:[#allocation9 + $0x68] sm:$0xff] }
  0xb9   : > { %2276 = vmatpush3.msra.mxu1 %v798_v56  ;;  %1982 = vmatprep.subr.mxu0 %v781_v58  ;;  %v999_v56 = vld [vmem:[#allocation9 + $0x168] sm:$0xff]  ;;  %v982_v58 = vld [vmem:[#allocation9 + $0xe0] sm:$0xff] }
  0xba   : > { %2277 = vmatprep.subr.mxu1 %v2830_v0  ;;  %1983 = vmatpush3.msra.mxu0 %v765_v60  ;;  %v966_v60 = vld [vmem:[#allocation9 + $0x60] sm:$0xff] }
  0xbb   : > { %2278 = vmatpush3.msra.mxu1 %v797_v59  ;;  %1984 = vmatprep.subr.mxu0 %v780_v61  ;;  %v998_v59 = vld [vmem:[#allocation9 + $0x160] sm:$0xff]  ;;  %v981_v61 = vld [vmem:[#allocation9 + $0xd8] sm:$0xff] }
  0xbc   : > { %2279 = vmatprep.subr.mxu1 %v2830_v0  ;;  %1985 = vmatpush3.msra.mxu0 %v764_v63  ;;  %v965_v63 = vld [vmem:[#allocation9 + $0x58] sm:$0xff] }
  0xbd   : > { %2280 = vmatpush3.msra.mxu1 %v796_v62  ;;  %1986 = vmatprep.subr.mxu0 %v779_v1  ;;  %v997_v62 = vld [vmem:[#allocation9 + $0x158] sm:$0xff]  ;;  %v980_v1 = vld [vmem:[#allocation9 + $0xd0] sm:$0xff] }
  0xbe   : > { %2281 = vmatprep.subr.mxu1 %v2830_v0  ;;  %1987 = vmatpush3.msra.mxu0 %v763_v3  ;;  %v964_v3 = vld [vmem:[#allocation9 + $0x50] sm:$0xff] }
  0xbf   : > { %2282 = vmatpush3.msra.mxu1 %v795_v2  ;;  %1988 = vmatprep.subr.mxu0 %v778_v4  ;;  %v996_v2 = vld [vmem:[#allocation9 + $0x150] sm:$0xff]  ;;  %v979_v4 = vld [vmem:[#allocation9 + $0xc8] sm:$0xff] }
  0xc0   : > { %2283 = vmatprep.subr.mxu1 %v2830_v0  ;;  %2305 = vmatprep.mubr.msk.f32.mxu1 %vm2831_vm0, %v2830_v0 }
  0xc1   : > { %2284 = vmatpush3.msra.mxu1 %v794_v5  ;;  %1989 = vmatpush3.msra.mxu0 %v762_v6  ;;  %v995_v5 = vld [vmem:[#allocation9 + $0x148] sm:$0xff] }
  0xc2   : > { %2285 = vmatprep.subr.mxu1 %v2830_v0  ;;  %1990 = vmatprep.subr.mxu0 %v777_v7  ;;  %v963_v6 = vld [vmem:[#allocation9 + $0x48] sm:$0xff]  ;;  %v978_v7 = vld [vmem:[#allocation9 + $0xc0] sm:$0xff] }
  0xc3   : > { %2286 = vmatpush3.msra.mxu1 %v793_v8  ;;  %1991 = vmatpush3.msra.mxu0 %v761_v9  ;;  %v994_v8 = vld [vmem:[#allocation9 + $0x140] sm:$0xff] }
  0xc4   : > { %2287 = vmatprep.subr.mxu1 %v2830_v0  ;;  %1992 = vmatprep.subr.mxu0 %v776_v10  ;;  %v962_v9 = vld [vmem:[#allocation9 + $0x40] sm:$0xff]  ;;  %v977_v10 = vld [vmem:[#allocation9 + $0xb8] sm:$0xff] }
  0xc5   : > { %2288 = vmatpush3.msra.mxu1 %v792_v11  ;;  %1993 = vmatpush3.msra.mxu0 %v760_v12  ;;  %v993_v11 = vld [vmem:[#allocation9 + $0x138] sm:$0xff] }
  0xc6   : > { %2289 = vmatprep.subr.mxu1 %v2830_v0  ;;  %1994 = vmatprep.subr.mxu0 %v775_v13  ;;  %v961_v12 = vld [vmem:[#allocation9 + $0x38] sm:$0xff]  ;;  %v976_v13 = vld [vmem:[#allocation9 + $0xb0] sm:$0xff] }
  0xc7   : > { %2290 = vmatpush3.msra.mxu1 %v791_v14  ;;  %1995 = vmatpush3.msra.mxu0 %v759_v15  ;;  %v992_v14 = vld [vmem:[#allocation9 + $0x130] sm:$0xff] }
  0xc8   : > { %2291 = vmatprep.subr.mxu1 %v2830_v0  ;;  %1996 = vmatprep.subr.mxu0 %v774_v16  ;;  %v960_v15 = vld [vmem:[#allocation9 + $0x30] sm:$0xff]  ;;  %v975_v16 = vld [vmem:[#allocation9 + $0xa8] sm:$0xff] }
  0xc9   : > { %2292 = vmatpush3.msra.mxu1 %v790_v17  ;;  %1997 = vmatpush3.msra.mxu0 %v758_v18  ;;  %v991_v17 = vld [vmem:[#allocation9 + $0x128] sm:$0xff] }
  0xca   : > { %2293 = vmatprep.subr.mxu1 %v2830_v0  ;;  %1998 = vmatprep.subr.mxu0 %v773_v19  ;;  %v959_v18 = vld [vmem:[#allocation9 + $0x28] sm:$0xff]  ;;  %v974_v19 = vld [vmem:[#allocation9 + $0xa0] sm:$0xff] }
  0xcb   : > { %2294 = vmatpush3.msra.mxu1 %v789_v20  ;;  %1999 = vmatpush3.msra.mxu0 %v757_v21  ;;  %v990_v20 = vld [vmem:[#allocation9 + $0x120] sm:$0xff] }
  0xcc   : > { %2295 = vmatprep.subr.mxu1 %v2830_v0  ;;  %2000 = vmatprep.subr.mxu0 %v772_v22  ;;  %v958_v21 = vld [vmem:[#allocation9 + $0x20] sm:$0xff]  ;;  %v973_v22 = vld [vmem:[#allocation9 + $0x98] sm:$0xff] }
  0xcd   : > { %2296 = vmatpush3.msra.mxu1 %v788_v23  ;;  %2001 = vmatpush3.msra.mxu0 %v756_v24  ;;  %v989_v23 = vld [vmem:[#allocation9 + $0x118] sm:$0xff] }
  0xce   : > { %2297 = vmatprep.subr.mxu1 %v2830_v0  ;;  %2002 = vmatprep.subr.mxu0 %v771_v25  ;;  %v957_v24 = vld [vmem:[#allocation9 + $0x18] sm:$0xff]  ;;  %v972_v25 = vld [vmem:[#allocation9 + $0x90] sm:$0xff] }
  0xcf   : > { %2298 = vmatpush3.msra.mxu1 %v787_v26  ;;  %2003 = vmatpush3.msra.mxu0 %v755_v27  ;;  %v988_v26 = vld [vmem:[#allocation9 + $0x110] sm:$0xff] }
  0xd0   : > { %2299 = vmatprep.subr.mxu1 %v2830_v0  ;;  %2004 = vmatprep.subr.mxu0 %v770_v28  ;;  %v956_v27 = vld [vmem:[#allocation9 + $0x10] sm:$0xff]  ;;  %v971_v28 = vld [vmem:[#allocation9 + $0x88] sm:$0xff] }
  0xd1   : > { %2300 = vmatpush3.msra.mxu1 %v786_v29  ;;  %2005 = vmatpush3.msra.mxu0 %v754_v30  ;;  %v987_v29 = vld [vmem:[#allocation9 + $0x108] sm:$0xff] }
  0xd2   : > { %2301 = vmatprep.subr.mxu1 %v2830_v0  ;;  %2006 = vmatprep.subr.mxu0 %v769_v31  ;;  %v955_v30 = vld [vmem:[#allocation9 + $0x8] sm:$0xff]  ;;  %v970_v31 = vld [vmem:[#allocation9 + $0x80] sm:$0xff] }
  0xd3   : > { %2302 = vmatpush3.msra.mxu1 %v785_v32  ;;  %2007 = vmatpush3.msra.mxu0 %v753_v33  ;;  %v986_v32 = vld [vmem:[#allocation9 + $0x100] sm:$0xff] }
  0xd4   : > { %2303 = vmatprep.subr.mxu1 %v2830_v0  ;;  %2008 = vmatprep.subr.mxu0 %v768_v34  ;;  %v954_v33 = vld [vmem:[#allocation9] sm:$0xff]  ;;  %v1185_v34 = vld [vmem:[#allocation11 + $0xf8] sm:$0xff] }
  0xd5   : > { %2304 = vmatpush3.msra.mxu1 %v784_v35  ;;  %2009 = vmatpush3.msra.mxu0 %v752_v36 }
  0xd6   : > { %2308 = vmatprep.subr.mxu1 %v2830_v0  ;;  %2030 = vmatprep.subr.mxu0 %v985_v37 }
 0x174   : > { %v1958_v38 = vpop.f32.mrf.mxu0 }
 0x175   : > { %v741_v41 = vpop.f32.mrf.mxu1 }
 0x176   : > { %v1959_v39 = vpop.f32.mrf.mxu0 }
 0x177   : > { %v1960_v42 = vadd.f32 %v1959_v39, %v1958_v38  ;;  %v2272_v43 = vpop.f32.mrf.mxu1  ;;  %v1917_v38 = vld [vmem:[%s3291_s4] ss:$0 sm:$0xff] }
 0x179   : > { %v672_v44 = vadd.f32 %v1960_v42, %v1916_v40 }
 0x17b   : > { %v742_v45 = vadd.f32 %v741_v41, %v672_v44 }
 0x17d   : > { %vm745_vm1 = vcmp.gt.f32.partialorder %v742_v45, 0.0  ;;  %v746_v46 = vmul.f32 0.2, %v742_v45 }
 0x17f   : > { %v3154_v47 = vsel %vm745_vm1, %v742_v45, %v746_v46  ;;  %v1201_v45 = vld [vmem:[#allocation11 + $0x178] sm:$0xff] }
 0x180   : > { %748 = vst [vmem:[#allocation2 + $0x1] sm:$0xff] %v3154_v47  ;;  %871 = vmatprep.mubr.f32.mxu0 %v3154_v47  ;;  %v1169_v46 = vld [vmem:[#allocation11 + $0x78] sm:$0xff] }
 0x187   : > { %v751_v50 = vld [vmem:[#allocation2 + $0x2] sm:$0xff] }
 0x188   : > { %v749_v51 = vld [vmem:[#allocation2] sm:$0xff]  ;;  %2306 = vmatmul.mubr.f32.vlgmr.msra.gmra.mxu1 %v751_v50  ;;  %v1184_v50 = vld [vmem:[#allocation11 + $0xf0] sm:$0xff] }
 0x189   : > { %872 = vmatmul.mubr.f32.vlgmr.msra.gmra.mxu0 %v749_v51  ;;  %2309 = vmatpush3.msra.mxu1 %v1001_v48  ;;  %v1200_v51 = vld [vmem:[#allocation11 + $0x170] sm:$0xff] }
 0x18a   : > { %2031 = vmatpush3.msra.mxu0 %v969_v49  ;;  %2310 = vmatprep.subr.mxu1 %v2830_v0 }
 0x18b   : > { %2032 = vmatprep.subr.mxu0 %v984_v52  ;;  %2311 = vmatpush3.msra.mxu1 %v1000_v53  ;;  %v1168_v52 = vld [vmem:[#allocation11 + $0x70] sm:$0xff]  ;;  %v1183_v53 = vld [vmem:[#allocation11 + $0xe8] sm:$0xff] }
 0x18c   : > { %2033 = vmatpush3.msra.mxu0 %v968_v54  ;;  %2312 = vmatprep.subr.mxu1 %v2830_v0  ;;  %v1199_v54 = vld [vmem:[#allocation11 + $0x168] sm:$0xff] }
 0x18d   : > { %2034 = vmatprep.subr.mxu0 %v983_v55  ;;  %2313 = vmatpush3.msra.mxu1 %v999_v56  ;;  %v1167_v55 = vld [vmem:[#allocation11 + $0x68] sm:$0xff]  ;;  %v1182_v56 = vld [vmem:[#allocation11 + $0xe0] sm:$0xff] }
 0x18e   : > { %2035 = vmatpush3.msra.mxu0 %v967_v57  ;;  %2314 = vmatprep.subr.mxu1 %v2830_v0  ;;  %v1198_v57 = vld [vmem:[#allocation11 + $0x160] sm:$0xff] }
 0x18f   : > { %2036 = vmatprep.subr.mxu0 %v982_v58  ;;  %2315 = vmatpush3.msra.mxu1 %v998_v59  ;;  %v1166_v58 = vld [vmem:[#allocation11 + $0x60] sm:$0xff]  ;;  %v1181_v59 = vld [vmem:[#allocation11 + $0xd8] sm:$0xff] }
 0x190   : > { %2037 = vmatpush3.msra.mxu0 %v966_v60  ;;  %2316 = vmatprep.subr.mxu1 %v2830_v0  ;;  %v1197_v60 = vld [vmem:[#allocation11 + $0x158] sm:$0xff] }
 0x191   : > { %2038 = vmatprep.subr.mxu0 %v981_v61  ;;  %2317 = vmatpush3.msra.mxu1 %v997_v62  ;;  %v1165_v61 = vld [vmem:[#allocation11 + $0x58] sm:$0xff]  ;;  %v1180_v62 = vld [vmem:[#allocation11 + $0xd0] sm:$0xff] }
 0x192   : > { %2039 = vmatpush3.msra.mxu0 %v965_v63  ;;  %2318 = vmatprep.subr.mxu1 %v2830_v0  ;;  %v1196_v63 = vld [vmem:[#allocation11 + $0x150] sm:$0xff] }
 0x193   : > { %2340 = vmatprep.mubr.msk.f32.mxu1 %vm2831_vm0, %v2830_v0  ;;  %2040 = vmatprep.subr.mxu0 %v980_v1  ;;  %v1164_v1 = vld [vmem:[#allocation11 + $0x50] sm:$0xff] }
 0x194   : > { %2319 = vmatpush3.msra.mxu1 %v996_v2  ;;  %2041 = vmatpush3.msra.mxu0 %v964_v3  ;;  %v1179_v2 = vld [vmem:[#allocation11 + $0xc8] sm:$0xff] }
 0x195   : > { %2320 = vmatprep.subr.mxu1 %v2830_v0  ;;  %2042 = vmatprep.subr.mxu0 %v979_v4  ;;  %v1195_v3 = vld [vmem:[#allocation11 + $0x148] sm:$0xff] }
 0x196   : > { %2321 = vmatpush3.msra.mxu1 %v995_v5  ;;  %2043 = vmatpush3.msra.mxu0 %v963_v6  ;;  %v1163_v4 = vld [vmem:[#allocation11 + $0x48] sm:$0xff]  ;;  %v1178_v5 = vld [vmem:[#allocation11 + $0xc0] sm:$0xff] }
 0x197   : > { %2322 = vmatprep.subr.mxu1 %v2830_v0  ;;  %2044 = vmatprep.subr.mxu0 %v978_v7  ;;  %v1194_v6 = vld [vmem:[#allocation11 + $0x140] sm:$0xff] }
 0x198   : > { %2323 = vmatpush3.msra.mxu1 %v994_v8  ;;  %2045 = vmatpush3.msra.mxu0 %v962_v9  ;;  %v1162_v7 = vld [vmem:[#allocation11 + $0x40] sm:$0xff]  ;;  %v1177_v8 = vld [vmem:[#allocation11 + $0xb8] sm:$0xff] }
 0x199   : > { %2324 = vmatprep.subr.mxu1 %v2830_v0  ;;  %2046 = vmatprep.subr.mxu0 %v977_v10  ;;  %v1193_v9 = vld [vmem:[#allocation11 + $0x138] sm:$0xff] }
 0x19a   : > { %2325 = vmatpush3.msra.mxu1 %v993_v11  ;;  %2047 = vmatpush3.msra.mxu0 %v961_v12  ;;  %v1161_v10 = vld [vmem:[#allocation11 + $0x38] sm:$0xff]  ;;  %v1176_v11 = vld [vmem:[#allocation11 + $0xb0] sm:$0xff] }
 0x19b   : > { %2326 = vmatprep.subr.mxu1 %v2830_v0  ;;  %2048 = vmatprep.subr.mxu0 %v976_v13  ;;  %v1192_v12 = vld [vmem:[#allocation11 + $0x130] sm:$0xff] }
 0x19c   : > { %2327 = vmatpush3.msra.mxu1 %v992_v14  ;;  %2049 = vmatpush3.msra.mxu0 %v960_v15  ;;  %v1160_v13 = vld [vmem:[#allocation11 + $0x30] sm:$0xff]  ;;  %v1175_v14 = vld [vmem:[#allocation11 + $0xa8] sm:$0xff] }
 0x19d   : > { %2328 = vmatprep.subr.mxu1 %v2830_v0  ;;  %2050 = vmatprep.subr.mxu0 %v975_v16  ;;  %v1191_v15 = vld [vmem:[#allocation11 + $0x128] sm:$0xff] }
 0x19e   : > { %2329 = vmatpush3.msra.mxu1 %v991_v17  ;;  %2051 = vmatpush3.msra.mxu0 %v959_v18  ;;  %v1159_v16 = vld [vmem:[#allocation11 + $0x28] sm:$0xff]  ;;  %v1174_v17 = vld [vmem:[#allocation11 + $0xa0] sm:$0xff] }
 0x19f   : > { %2330 = vmatprep.subr.mxu1 %v2830_v0  ;;  %2052 = vmatprep.subr.mxu0 %v974_v19  ;;  %v1190_v18 = vld [vmem:[#allocation11 + $0x120] sm:$0xff] }
 0x1a0   : > { %2331 = vmatpush3.msra.mxu1 %v990_v20  ;;  %2053 = vmatpush3.msra.mxu0 %v958_v21  ;;  %v1158_v19 = vld [vmem:[#allocation11 + $0x20] sm:$0xff]  ;;  %v1173_v20 = vld [vmem:[#allocation11 + $0x98] sm:$0xff] }
 0x1a1   : > { %2332 = vmatprep.subr.mxu1 %v2830_v0  ;;  %2054 = vmatprep.subr.mxu0 %v973_v22  ;;  %v1189_v21 = vld [vmem:[#allocation11 + $0x118] sm:$0xff] }
 0x1a2   : > { %2333 = vmatpush3.msra.mxu1 %v989_v23  ;;  %2055 = vmatpush3.msra.mxu0 %v957_v24  ;;  %v1157_v22 = vld [vmem:[#allocation11 + $0x18] sm:$0xff]  ;;  %v1172_v23 = vld [vmem:[#allocation11 + $0x90] sm:$0xff] }
 0x1a3   : > { %2334 = vmatprep.subr.mxu1 %v2830_v0  ;;  %2056 = vmatprep.subr.mxu0 %v972_v25  ;;  %v1188_v24 = vld [vmem:[#allocation11 + $0x110] sm:$0xff] }
 0x1a4   : > { %2335 = vmatpush3.msra.mxu1 %v988_v26  ;;  %2057 = vmatpush3.msra.mxu0 %v956_v27  ;;  %v1156_v25 = vld [vmem:[#allocation11 + $0x10] sm:$0xff]  ;;  %v1171_v26 = vld [vmem:[#allocation11 + $0x88] sm:$0xff] }
 0x1a5   : > { %2336 = vmatprep.subr.mxu1 %v2830_v0  ;;  %2058 = vmatprep.subr.mxu0 %v971_v28  ;;  %v1187_v27 = vld [vmem:[#allocation11 + $0x108] sm:$0xff] }
 0x1a6   : > { %2337 = vmatpush3.msra.mxu1 %v987_v29  ;;  %2059 = vmatpush3.msra.mxu0 %v955_v30  ;;  %v1155_v28 = vld [vmem:[#allocation11 + $0x8] sm:$0xff]  ;;  %v1170_v29 = vld [vmem:[#allocation11 + $0x80] sm:$0xff] }
 0x1a7   : > { %2338 = vmatprep.subr.mxu1 %v2830_v0  ;;  %2060 = vmatprep.subr.mxu0 %v970_v31  ;;  %v1186_v30 = vld [vmem:[#allocation11 + $0x100] sm:$0xff] }
 0x1a8   : > { %2339 = vmatpush3.msra.mxu1 %v986_v32  ;;  %2061 = vmatpush3.msra.mxu0 %v954_v33  ;;  %v1154_v31 = vld [vmem:[#allocation11] sm:$0xff]  ;;  %v1387_v32 = vld [vmem:[#allocation12 + $0xf8] sm:$0xff] }
 0x1a9   : > { %2343 = vmatprep.subr.mxu1 %v2830_v0  ;;  %2082 = vmatprep.subr.mxu0 %v1185_v34 }
 0x248   : > { %v943_v35 = vpop.f32.mrf.mxu1 }
 0x249   : > { %v2010_v36 = vpop.f32.mrf.mxu0 }
 0x24a   : > { %v2307_v37 = vpop.f32.mrf.mxu1 }
 0x24b   : > { %v2011_v39 = vpop.f32.mrf.mxu0 }
 0x24c   : > { %v2012_v40 = vadd.f32 %v2011_v39, %v2010_v36  ;;  %v1918_v36 = vld [vmem:[%s3293_s6] ss:$0 sm:$0xff] }
 0x24e   : > { %v874_v41 = vadd.f32 %v2012_v40, %v1917_v38 }
 0x250   : > { %v944_v42 = vadd.f32 %v943_v35, %v874_v41 }
 0x252   : > { %vm947_vm2 = vcmp.gt.f32.partialorder %v944_v42, 0.0  ;;  %v948_v43 = vmul.f32 0.2, %v944_v42 }
 0x254   : > { %v949_v44 = vsel %vm947_vm2, %v944_v42, %v948_v43  ;;  %v1403_v42 = vld [vmem:[#allocation12 + $0x178] sm:$0xff] }
 0x255   : > { %950 = vst [vmem:[#allocation2 + $0x1] sm:$0xff] %v949_v44  ;;  %1073 = vmatprep.mubr.f32.mxu0 %v949_v44  ;;  %v1371_v43 = vld [vmem:[#allocation12 + $0x78] sm:$0xff] }
 0x25c   : > { %v953_v48 = vld [vmem:[#allocation2 + $0x2] sm:$0xff] }
 0x25d   : > { %v951_v49 = vld [vmem:[#allocation2] sm:$0xff]  ;;  %2341 = vmatmul.mubr.f32.vlgmr.msra.gmra.mxu1 %v953_v48  ;;  %v1402_v48 = vld [vmem:[#allocation12 + $0x170] sm:$0xff] }
 0x25e   : > { %1074 = vmatmul.mubr.f32.vlgmr.msra.gmra.mxu0 %v951_v49  ;;  %2344 = vmatpush3.msra.mxu1 %v1201_v45  ;;  %v1370_v49 = vld [vmem:[#allocation12 + $0x70] sm:$0xff] }
 0x25f   : > { %2083 = vmatpush3.msra.mxu0 %v1169_v46  ;;  %2345 = vmatprep.subr.mxu1 %v2830_v0  ;;  %v1386_v46 = vld [vmem:[#allocation12 + $0xf0] sm:$0xff] }
 0x260   : > { %2084 = vmatprep.subr.mxu0 %v1184_v50  ;;  %2346 = vmatpush3.msra.mxu1 %v1200_v51  ;;  %v1385_v50 = vld [vmem:[#allocation12 + $0xe8] sm:$0xff] }
 0x261   : > { %2085 = vmatpush3.msra.mxu0 %v1168_v52  ;;  %2347 = vmatprep.subr.mxu1 %v2830_v0  ;;  %v1401_v51 = vld [vmem:[#allocation12 + $0x168] sm:$0xff] }
 0x262   : > { %2086 = vmatprep.subr.mxu0 %v1183_v53  ;;  %2348 = vmatpush3.msra.mxu1 %v1199_v54  ;;  %v1369_v52 = vld [vmem:[#allocation12 + $0x68] sm:$0xff]  ;;  %v1400_v53 = vld [vmem:[#allocation12 + $0x160] sm:$0xff] }
 0x263   : > { %2087 = vmatpush3.msra.mxu0 %v1167_v55  ;;  %2349 = vmatprep.subr.mxu1 %v2830_v0  ;;  %v1368_v54 = vld [vmem:[#allocation12 + $0x60] sm:$0xff]  ;;  %v1383_v55 = vld [vmem:[#allocation12 + $0xd8] sm:$0xff] }
 0x264   : > { %2088 = vmatprep.subr.mxu0 %v1182_v56  ;;  %2350 = vmatpush3.msra.mxu1 %v1198_v57  ;;  %v1399_v56 = vld [vmem:[#allocation12 + $0x158] sm:$0xff] }
 0x265   : > { %2089 = vmatpush3.msra.mxu0 %v1166_v58  ;;  %2351 = vmatprep.subr.mxu1 %v2830_v0  ;;  %v1367_v57 = vld [vmem:[#allocation12 + $0x58] sm:$0xff]  ;;  %v1382_v58 = vld [vmem:[#allocation12 + $0xd0] sm:$0xff] }
 0x266   : > { %2090 = vmatprep.subr.mxu0 %v1181_v59  ;;  %2352 = vmatpush3.msra.mxu1 %v1197_v60  ;;  %v1398_v59 = vld [vmem:[#allocation12 + $0x150] sm:$0xff] }
 0x267   : > { %2091 = vmatpush3.msra.mxu0 %v1165_v61  ;;  %2353 = vmatprep.subr.mxu1 %v2830_v0  ;;  %v1366_v60 = vld [vmem:[#allocation12 + $0x50] sm:$0xff]  ;;  %v1381_v61 = vld [vmem:[#allocation12 + $0xc8] sm:$0xff] }
 0x268   : > { %2092 = vmatprep.subr.mxu0 %v1180_v62  ;;  %2354 = vmatpush3.msra.mxu1 %v1196_v63  ;;  %v1397_v62 = vld [vmem:[#allocation12 + $0x148] sm:$0xff] }
 0x269   : > { %2375 = vmatprep.mubr.msk.f32.mxu1 %vm2831_vm0, %v2830_v0  ;;  %2355 = vmatprep.subr.mxu1 %v2830_v0  ;;  %v1365_v63 = vld [vmem:[#allocation12 + $0x48] sm:$0xff] }
 0x26a   : > { %2093 = vmatpush3.msra.mxu0 %v1164_v1  ;;  %2356 = vmatpush3.msra.mxu1 %v1195_v3  ;;  %v1380_v1 = vld [vmem:[#allocation12 + $0xc0] sm:$0xff] }
 0x26b   : > { %2094 = vmatprep.subr.mxu0 %v1179_v2  ;;  %2357 = vmatprep.subr.mxu1 %v2830_v0  ;;  %v1396_v2 = vld [vmem:[#allocation12 + $0x140] sm:$0xff] }
 0x26c   : > { %2095 = vmatpush3.msra.mxu0 %v1163_v4  ;;  %2358 = vmatpush3.msra.mxu1 %v1194_v6  ;;  %v1364_v3 = vld [vmem:[#allocation12 + $0x40] sm:$0xff]  ;;  %v1379_v4 = vld [vmem:[#allocation12 + $0xb8] sm:$0xff] }
 0x26d   : > { %2096 = vmatprep.subr.mxu0 %v1178_v5  ;;  %2359 = vmatprep.subr.mxu1 %v2830_v0  ;;  %v1395_v5 = vld [vmem:[#allocation12 + $0x138] sm:$0xff] }
 0x26e   : > { %2097 = vmatpush3.msra.mxu0 %v1162_v7  ;;  %2360 = vmatpush3.msra.mxu1 %v1193_v9  ;;  %v1363_v6 = vld [vmem:[#allocation12 + $0x38] sm:$0xff]  ;;  %v1378_v7 = vld [vmem:[#allocation12 + $0xb0] sm:$0xff] }
 0x26f   : > { %2098 = vmatprep.subr.mxu0 %v1177_v8  ;;  %2361 = vmatprep.subr.mxu1 %v2830_v0  ;;  %v1394_v8 = vld [vmem:[#allocation12 + $0x130] sm:$0xff] }
 0x270   : > { %2099 = vmatpush3.msra.mxu0 %v1161_v10  ;;  %2362 = vmatpush3.msra.mxu1 %v1192_v12  ;;  %v1362_v9 = vld [vmem:[#allocation12 + $0x30] sm:$0xff]  ;;  %v1377_v10 = vld [vmem:[#allocation12 + $0xa8] sm:$0xff] }
 0x271   : > { %2100 = vmatprep.subr.mxu0 %v1176_v11  ;;  %2363 = vmatprep.subr.mxu1 %v2830_v0  ;;  %v1393_v11 = vld [vmem:[#allocation12 + $0x128] sm:$0xff] }
 0x272   : > { %2101 = vmatpush3.msra.mxu0 %v1160_v13  ;;  %2364 = vmatpush3.msra.mxu1 %v1191_v15  ;;  %v1361_v12 = vld [vmem:[#allocation12 + $0x28] sm:$0xff]  ;;  %v1376_v13 = vld [vmem:[#allocation12 + $0xa0] sm:$0xff] }
 0x273   : > { %2102 = vmatprep.subr.mxu0 %v1175_v14  ;;  %2365 = vmatprep.subr.mxu1 %v2830_v0  ;;  %v1392_v14 = vld [vmem:[#allocation12 + $0x120] sm:$0xff] }
 0x274   : > { %2103 = vmatpush3.msra.mxu0 %v1159_v16  ;;  %2366 = vmatpush3.msra.mxu1 %v1190_v18  ;;  %v1360_v15 = vld [vmem:[#allocation12 + $0x20] sm:$0xff]  ;;  %v1375_v16 = vld [vmem:[#allocation12 + $0x98] sm:$0xff] }
 0x275   : > { %2104 = vmatprep.subr.mxu0 %v1174_v17  ;;  %2367 = vmatprep.subr.mxu1 %v2830_v0  ;;  %v1391_v17 = vld [vmem:[#allocation12 + $0x118] sm:$0xff] }
 0x276   : > { %2105 = vmatpush3.msra.mxu0 %v1158_v19  ;;  %2368 = vmatpush3.msra.mxu1 %v1189_v21  ;;  %v1359_v18 = vld [vmem:[#allocation12 + $0x18] sm:$0xff]  ;;  %v1374_v19 = vld [vmem:[#allocation12 + $0x90] sm:$0xff] }
 0x277   : > { %2106 = vmatprep.subr.mxu0 %v1173_v20  ;;  %2369 = vmatprep.subr.mxu1 %v2830_v0  ;;  %v1390_v20 = vld [vmem:[#allocation12 + $0x110] sm:$0xff] }
 0x278   : > { %2107 = vmatpush3.msra.mxu0 %v1157_v22  ;;  %2370 = vmatpush3.msra.mxu1 %v1188_v24  ;;  %v1358_v21 = vld [vmem:[#allocation12 + $0x10] sm:$0xff]  ;;  %v1373_v22 = vld [vmem:[#allocation12 + $0x88] sm:$0xff] }
 0x279   : > { %2108 = vmatprep.subr.mxu0 %v1172_v23  ;;  %2371 = vmatprep.subr.mxu1 %v2830_v0  ;;  %v1389_v23 = vld [vmem:[#allocation12 + $0x108] sm:$0xff] }
 0x27a   : > { %2109 = vmatpush3.msra.mxu0 %v1156_v25  ;;  %2372 = vmatpush3.msra.mxu1 %v1187_v27  ;;  %v1357_v24 = vld [vmem:[#allocation12 + $0x8] sm:$0xff]  ;;  %v1372_v25 = vld [vmem:[#allocation12 + $0x80] sm:$0xff] }
 0x27b   : > { %2110 = vmatprep.subr.mxu0 %v1171_v26  ;;  %2373 = vmatprep.subr.mxu1 %v2830_v0  ;;  %v1388_v26 = vld [vmem:[#allocation12 + $0x100] sm:$0xff] }
 0x27c   : > { %2111 = vmatpush3.msra.mxu0 %v1155_v28  ;;  %2374 = vmatpush3.msra.mxu1 %v1186_v30  ;;  %v1356_v27 = vld [vmem:[#allocation12] sm:$0xff]  ;;  %v1589_v28 = vld [vmem:[#allocation14 + $0xf8] sm:$0xff] }
 0x27d   : > { %2112 = vmatprep.subr.mxu0 %v1170_v29  ;;  %2378 = vmatprep.subr.mxu1 %v2830_v0 }
 0x27e   : > { %2113 = vmatpush3.msra.mxu0 %v1154_v31 }
 0x27f   : > { %2134 = vmatprep.subr.mxu0 %v1387_v32  ;;  %v1919_v32 = vld [vmem:[%s3295_s8] ss:$0 sm:$0xff] }
 0x31d   : > { %v1145_v33 = vpop.f32.mrf.mxu1 }
 0x31e   : > { %v2062_v34 = vpop.f32.mrf.mxu0 }
 0x31f   : > { %v2342_v35 = vpop.f32.mrf.mxu1 }
 0x320   : > { %v2063_v37 = vpop.f32.mrf.mxu0 }
 0x321   : > { %v2064_v38 = vadd.f32 %v2063_v37, %v2062_v34 }
 0x323   : > { %v1076_v39 = vadd.f32 %v2064_v38, %v1918_v36 }
 0x325   : > { %v1146_v40 = vadd.f32 %v1145_v33, %v1076_v39  ;;  %v1605_v39 = vld [vmem:[#allocation14 + $0x178] sm:$0xff] }
 0x327   : > { %v1149_v41 = vadd.f32 %v1146_v40, %v3154_v47  ;;  %v1384_v47 = vld [vmem:[#allocation12 + $0xe0] sm:$0xff]  ;;  %v1573_v40 = vld [vmem:[#allocation14 + $0x78] sm:$0xff] }
 0x329   : > { %1150 = vst [vmem:[#allocation2 + $0x1] sm:$0xff] %v1149_v41  ;;  %1273 = vmatprep.mubr.f32.mxu0 %v1149_v41 }
 0x330   : > { %v1153_v44 = vld [vmem:[#allocation2 + $0x2] sm:$0xff] }
 0x331   : > { %v1151_v45 = vld [vmem:[#allocation2] sm:$0xff]  ;;  %2376 = vmatmul.mubr.f32.vlgmr.msra.gmra.mxu1 %v1153_v44  ;;  %v1604_v44 = vld [vmem:[#allocation14 + $0x170] sm:$0xff] }
 0x332   : > { %1274 = vmatmul.mubr.f32.vlgmr.msra.gmra.mxu0 %v1151_v45  ;;  %2379 = vmatpush3.msra.mxu1 %v1403_v42  ;;  %v1572_v45 = vld [vmem:[#allocation14 + $0x70] sm:$0xff] }
 0x333   : > { %2135 = vmatpush3.msra.mxu0 %v1371_v43  ;;  %2380 = vmatprep.subr.mxu1 %v2830_v0  ;;  %v1588_v43 = vld [vmem:[#allocation14 + $0xf0] sm:$0xff] }
 0x334   : > { %2136 = vmatprep.subr.mxu0 %v1386_v46  ;;  %2381 = vmatpush3.msra.mxu1 %v1402_v48  ;;  %v1587_v46 = vld [vmem:[#allocation14 + $0xe8] sm:$0xff] }
 0x335   : > { %2137 = vmatpush3.msra.mxu0 %v1370_v49  ;;  %2382 = vmatprep.subr.mxu1 %v2830_v0  ;;  %v1603_v48 = vld [vmem:[#allocation14 + $0x168] sm:$0xff] }
 0x336   : > { %2138 = vmatprep.subr.mxu0 %v1385_v50  ;;  %2383 = vmatpush3.msra.mxu1 %v1401_v51  ;;  %v1571_v49 = vld [vmem:[#allocation14 + $0x68] sm:$0xff]  ;;  %v1586_v50 = vld [vmem:[#allocation14 + $0xe0] sm:$0xff] }
 0x337   : > { %2139 = vmatpush3.msra.mxu0 %v1369_v52  ;;  %2384 = vmatprep.subr.mxu1 %v2830_v0  ;;  %v1602_v51 = vld [vmem:[#allocation14 + $0x160] sm:$0xff] }
 0x338   : > { %2140 = vmatprep.subr.mxu0 %v1384_v47  ;;  %2385 = vmatpush3.msra.mxu1 %v1400_v53  ;;  %v1570_v52 = vld [vmem:[#allocation14 + $0x60] sm:$0xff]  ;;  %v1585_v47 = vld [vmem:[#allocation14 + $0xd8] sm:$0xff] }
 0x339   : > { %2141 = vmatpush3.msra.mxu0 %v1368_v54  ;;  %2386 = vmatprep.subr.mxu1 %v2830_v0  ;;  %v1601_v53 = vld [vmem:[#allocation14 + $0x158] sm:$0xff] }
 0x33a   : > { %2142 = vmatprep.subr.mxu0 %v1383_v55  ;;  %2387 = vmatpush3.msra.mxu1 %v1399_v56  ;;  %v1569_v54 = vld [vmem:[#allocation14 + $0x58] sm:$0xff]  ;;  %v1584_v55 = vld [vmem:[#allocation14 + $0xd0] sm:$0xff] }
 0x33b   : > { %2143 = vmatpush3.msra.mxu0 %v1367_v57  ;;  %2388 = vmatprep.subr.mxu1 %v2830_v0  ;;  %v1600_v56 = vld [vmem:[#allocation14 + $0x150] sm:$0xff] }
 0x33c   : > { %2410 = vmatprep.mubr.msk.f32.mxu1 %vm2831_vm0, %v2830_v0  ;;  %2144 = vmatprep.subr.mxu0 %v1382_v58  ;;  %v1568_v57 = vld [vmem:[#allocation14 + $0x50] sm:$0xff]  ;;  %v1583_v58 = vld [vmem:[#allocation14 + $0xc8] sm:$0xff] }
 0x33d   : > { %2389 = vmatpush3.msra.mxu1 %v1398_v59  ;;  %2145 = vmatpush3.msra.mxu0 %v1366_v60  ;;  %v1599_v59 = vld [vmem:[#allocation14 + $0x148] sm:$0xff] }
 0x33e   : > { %2390 = vmatprep.subr.mxu1 %v2830_v0  ;;  %2146 = vmatprep.subr.mxu0 %v1381_v61  ;;  %v1567_v60 = vld [vmem:[#allocation14 + $0x48] sm:$0xff]  ;;  %v1582_v61 = vld [vmem:[#allocation14 + $0xc0] sm:$0xff] }
 0x33f   : > { %2391 = vmatpush3.msra.mxu1 %v1397_v62  ;;  %2147 = vmatpush3.msra.mxu0 %v1365_v63  ;;  %v1598_v62 = vld [vmem:[#allocation14 + $0x140] sm:$0xff] }
 0x340   : > { %2392 = vmatprep.subr.mxu1 %v2830_v0  ;;  %2148 = vmatprep.subr.mxu0 %v1380_v1  ;;  %v1566_v63 = vld [vmem:[#allocation14 + $0x40] sm:$0xff]  ;;  %v1581_v1 = vld [vmem:[#allocation14 + $0xb8] sm:$0xff] }
 0x341   : > { %2393 = vmatpush3.msra.mxu1 %v1396_v2  ;;  %2149 = vmatpush3.msra.mxu0 %v1364_v3  ;;  %v1597_v2 = vld [vmem:[#allocation14 + $0x138] sm:$0xff] }
 0x342   : > { %2394 = vmatprep.subr.mxu1 %v2830_v0  ;;  %2150 = vmatprep.subr.mxu0 %v1379_v4  ;;  %v1565_v3 = vld [vmem:[#allocation14 + $0x38] sm:$0xff]  ;;  %v1580_v4 = vld [vmem:[#allocation14 + $0xb0] sm:$0xff] }
 0x343   : > { %2395 = vmatpush3.msra.mxu1 %v1395_v5  ;;  %2151 = vmatpush3.msra.mxu0 %v1363_v6  ;;  %v1596_v5 = vld [vmem:[#allocation14 + $0x130] sm:$0xff] }
 0x344   : > { %2396 = vmatprep.subr.mxu1 %v2830_v0  ;;  %2152 = vmatprep.subr.mxu0 %v1378_v7  ;;  %v1564_v6 = vld [vmem:[#allocation14 + $0x30] sm:$0xff]  ;;  %v1579_v7 = vld [vmem:[#allocation14 + $0xa8] sm:$0xff] }
 0x345   : > { %2397 = vmatpush3.msra.mxu1 %v1394_v8  ;;  %2153 = vmatpush3.msra.mxu0 %v1362_v9  ;;  %v1595_v8 = vld [vmem:[#allocation14 + $0x128] sm:$0xff] }
 0x346   : > { %2398 = vmatprep.subr.mxu1 %v2830_v0  ;;  %2154 = vmatprep.subr.mxu0 %v1377_v10  ;;  %v1563_v9 = vld [vmem:[#allocation14 + $0x28] sm:$0xff]  ;;  %v1578_v10 = vld [vmem:[#allocation14 + $0xa0] sm:$0xff] }
 0x347   : > { %2399 = vmatpush3.msra.mxu1 %v1393_v11  ;;  %2155 = vmatpush3.msra.mxu0 %v1361_v12  ;;  %v1594_v11 = vld [vmem:[#allocation14 + $0x120] sm:$0xff] }
 0x348   : > { %2400 = vmatprep.subr.mxu1 %v2830_v0  ;;  %2156 = vmatprep.subr.mxu0 %v1376_v13  ;;  %v1562_v12 = vld [vmem:[#allocation14 + $0x20] sm:$0xff]  ;;  %v1577_v13 = vld [vmem:[#allocation14 + $0x98] sm:$0xff] }
 0x349   : > { %2401 = vmatpush3.msra.mxu1 %v1392_v14  ;;  %2157 = vmatpush3.msra.mxu0 %v1360_v15  ;;  %v1593_v14 = vld [vmem:[#allocation14 + $0x118] sm:$0xff] }
 0x34a   : > { %2402 = vmatprep.subr.mxu1 %v2830_v0  ;;  %2158 = vmatprep.subr.mxu0 %v1375_v16  ;;  %v1561_v15 = vld [vmem:[#allocation14 + $0x18] sm:$0xff]  ;;  %v1576_v16 = vld [vmem:[#allocation14 + $0x90] sm:$0xff] }
 0x34b   : > { %2403 = vmatpush3.msra.mxu1 %v1391_v17  ;;  %2159 = vmatpush3.msra.mxu0 %v1359_v18  ;;  %v1592_v17 = vld [vmem:[#allocation14 + $0x110] sm:$0xff] }
 0x34c   : > { %2404 = vmatprep.subr.mxu1 %v2830_v0  ;;  %2160 = vmatprep.subr.mxu0 %v1374_v19  ;;  %v1560_v18 = vld [vmem:[#allocation14 + $0x10] sm:$0xff]  ;;  %v1575_v19 = vld [vmem:[#allocation14 + $0x88] sm:$0xff] }
 0x34d   : > { %2405 = vmatpush3.msra.mxu1 %v1390_v20  ;;  %2161 = vmatpush3.msra.mxu0 %v1358_v21  ;;  %v1591_v20 = vld [vmem:[#allocation14 + $0x108] sm:$0xff] }
 0x34e   : > { %2406 = vmatprep.subr.mxu1 %v2830_v0  ;;  %2162 = vmatprep.subr.mxu0 %v1373_v22  ;;  %v1559_v21 = vld [vmem:[#allocation14 + $0x8] sm:$0xff]  ;;  %v1574_v22 = vld [vmem:[#allocation14 + $0x80] sm:$0xff] }
 0x34f   : > { %2407 = vmatpush3.msra.mxu1 %v1389_v23  ;;  %2163 = vmatpush3.msra.mxu0 %v1357_v24  ;;  %v1590_v23 = vld [vmem:[#allocation14 + $0x100] sm:$0xff] }
 0x350   : > { %2408 = vmatprep.subr.mxu1 %v2830_v0  ;;  %2164 = vmatprep.subr.mxu0 %v1372_v25  ;;  %v1558_v24 = vld [vmem:[#allocation14] sm:$0xff] }
 0x351   : > { %2409 = vmatpush3.msra.mxu1 %v1388_v26  ;;  %2165 = vmatpush3.msra.mxu0 %v1356_v27 }
 0x352   : > { %2413 = vmatprep.subr.mxu1 %v2830_v0  ;;  %2186 = vmatprep.subr.mxu0 %v1589_v28  ;;  %v1920_v28 = vld [vmem:[%s3297_s10] ss:$0 sm:$0xff] }
 0x3f1   : > { %v1345_v29 = vpop.f32.mrf.mxu1 }
 0x3f2   : > { %v2114_v30 = vpop.f32.mrf.mxu0 }
 0x3f3   : > { %v2377_v31 = vpop.f32.mrf.mxu1 }
 0x3f4   : > { %v2115_v33 = vpop.f32.mrf.mxu0 }
 0x3f5   : > { %v2116_v34 = vadd.f32 %v2115_v33, %v2114_v30 }
 0x3f7   : > { %v1276_v35 = vadd.f32 %v2116_v34, %v1919_v32 }
 0x3f9   : > { %v1346_v36 = vadd.f32 %v1345_v29, %v1276_v35 }
 0x3fb   : > { %vm1349_vm3 = vcmp.gt.f32.partialorder %v1346_v36, 0.0  ;;  %v1350_v37 = vmul.f32 0.2, %v1346_v36 }
 0x3fd   : > { %v3222_v38 = vsel %vm1349_vm3, %v1346_v36, %v1350_v37 }
 0x3fe   : > { %1352 = vst [vmem:[#allocation2 + $0x1] sm:$0xff] %v3222_v38  ;;  %1475 = vmatprep.mubr.f32.mxu0 %v3222_v38 }
 0x405   : > { %v1355_v41 = vld [vmem:[#allocation2 + $0x2] sm:$0xff] }
 0x406   : > { %v1353_v42 = vld [vmem:[#allocation2] sm:$0xff]  ;;  %2411 = vmatmul.mubr.f32.vlgmr.msra.gmra.mxu1 %v1355_v41 }
 0x407   : > { %1476 = vmatmul.mubr.f32.vlgmr.msra.gmra.mxu0 %v1353_v42  ;;  %2414 = vmatpush3.msra.mxu1 %v1605_v39 }
 0x408   : > { %2187 = vmatpush3.msra.mxu0 %v1573_v40  ;;  %2415 = vmatprep.subr.mxu1 %v2830_v0  ;;  %v1921_v40 = vld [vmem:[%s3299_s12] ss:$0 sm:$0xff] }
 0x409   : > { %2188 = vmatprep.subr.mxu0 %v1588_v43  ;;  %2416 = vmatpush3.msra.mxu1 %v1604_v44 }
 0x40a   : > { %2189 = vmatpush3.msra.mxu0 %v1572_v45  ;;  %2417 = vmatprep.subr.mxu1 %v2830_v0 }
 0x40b   : > { %2190 = vmatprep.subr.mxu0 %v1587_v46  ;;  %2418 = vmatpush3.msra.mxu1 %v1603_v48 }
 0x40c   : > { %2191 = vmatpush3.msra.mxu0 %v1571_v49  ;;  %2419 = vmatprep.subr.mxu1 %v2830_v0 }
 0x40d   : > { %2192 = vmatprep.subr.mxu0 %v1586_v50  ;;  %2420 = vmatpush3.msra.mxu1 %v1602_v51 }
 0x40e   : > { %2193 = vmatpush3.msra.mxu0 %v1570_v52  ;;  %2421 = vmatprep.subr.mxu1 %v2830_v0 }
 0x40f   : > { %2194 = vmatprep.subr.mxu0 %v1585_v47  ;;  %2422 = vmatpush3.msra.mxu1 %v1601_v53 }
 0x410   : > { %2195 = vmatpush3.msra.mxu0 %v1569_v54  ;;  %2423 = vmatprep.subr.mxu1 %v2830_v0 }
 0x411   : > { %2445 = vmatprep.mubr.msk.f32.mxu1 %vm2831_vm0, %v2830_v0  ;;  %2196 = vmatprep.subr.mxu0 %v1584_v55 }
 0x412   : > { %2424 = vmatpush3.msra.mxu1 %v1600_v56  ;;  %2197 = vmatpush3.msra.mxu0 %v1568_v57 }
 0x413   : > { %2425 = vmatprep.subr.mxu1 %v2830_v0  ;;  %2198 = vmatprep.subr.mxu0 %v1583_v58 }
 0x414   : > { %2426 = vmatpush3.msra.mxu1 %v1599_v59  ;;  %2199 = vmatpush3.msra.mxu0 %v1567_v60 }
 0x415   : > { %2427 = vmatprep.subr.mxu1 %v2830_v0  ;;  %2200 = vmatprep.subr.mxu0 %v1582_v61 }
 0x416   : > { %2428 = vmatpush3.msra.mxu1 %v1598_v62  ;;  %2201 = vmatpush3.msra.mxu0 %v1566_v63 }
 0x417   : > { %2429 = vmatprep.subr.mxu1 %v2830_v0  ;;  %2202 = vmatprep.subr.mxu0 %v1581_v1 }
 0x418   : > { %2430 = vmatpush3.msra.mxu1 %v1597_v2  ;;  %2203 = vmatpush3.msra.mxu0 %v1565_v3 }
 0x419   : > { %2431 = vmatprep.subr.mxu1 %v2830_v0  ;;  %2204 = vmatprep.subr.mxu0 %v1580_v4 }
 0x41a   : > { %2432 = vmatpush3.msra.mxu1 %v1596_v5  ;;  %2205 = vmatpush3.msra.mxu0 %v1564_v6 }
 0x41b   : > { %2433 = vmatprep.subr.mxu1 %v2830_v0  ;;  %2206 = vmatprep.subr.mxu0 %v1579_v7 }
 0x41c   : > { %2434 = vmatpush3.msra.mxu1 %v1595_v8  ;;  %2207 = vmatpush3.msra.mxu0 %v1563_v9 }
 0x41d   : > { %2435 = vmatprep.subr.mxu1 %v2830_v0  ;;  %2208 = vmatprep.subr.mxu0 %v1578_v10 }
 0x41e   : > { %2436 = vmatpush3.msra.mxu1 %v1594_v11  ;;  %2209 = vmatpush3.msra.mxu0 %v1562_v12 }
 0x41f   : > { %2437 = vmatprep.subr.mxu1 %v2830_v0  ;;  %2210 = vmatprep.subr.mxu0 %v1577_v13 }
 0x420   : > { %2438 = vmatpush3.msra.mxu1 %v1593_v14  ;;  %2211 = vmatpush3.msra.mxu0 %v1561_v15 }
 0x421   : > { %2439 = vmatprep.subr.mxu1 %v2830_v0  ;;  %2212 = vmatprep.subr.mxu0 %v1576_v16 }
 0x422   : > { %2440 = vmatpush3.msra.mxu1 %v1592_v17  ;;  %2213 = vmatpush3.msra.mxu0 %v1560_v18 }
 0x423   : > { %2441 = vmatprep.subr.mxu1 %v2830_v0  ;;  %2214 = vmatprep.subr.mxu0 %v1575_v19 }
 0x424   : > { %2442 = vmatpush3.msra.mxu1 %v1591_v20  ;;  %2215 = vmatpush3.msra.mxu0 %v1559_v21 }
 0x425   : > { %2443 = vmatprep.subr.mxu1 %v2830_v0  ;;  %2216 = vmatprep.subr.mxu0 %v1574_v22 }
 0x426   : > { %2444 = vmatpush3.msra.mxu1 %v1590_v23  ;;  %2217 = vmatpush3.msra.mxu0 %v1558_v24 }
 0x4c6   : > { %v1547_v25 = vpop.f32.mrf.mxu1 }
 0x4c7   : > { %v2166_v26 = vpop.f32.mrf.mxu0 }
 0x4c8   : > { %v2412_v27 = vpop.f32.mrf.mxu1 }
 0x4c9   : > { %v2167_v29 = vpop.f32.mrf.mxu0 }
 0x4ca   : > { %v2168_v30 = vadd.f32 %v2167_v29, %v2166_v26 }
 0x4cc   : > { %v1478_v31 = vadd.f32 %v2168_v30, %v1920_v28 }
 0x4ce   : > { %v1548_v32 = vadd.f32 %v1547_v25, %v1478_v31 }
 0x4d0   : > { %vm1551_vm4 = vcmp.gt.f32.partialorder %v1548_v32, 0.0  ;;  %v1552_v33 = vmul.f32 0.2, %v1548_v32 }
 0x4d2   : > { %v1553_v34 = vsel %vm1551_vm4, %v1548_v32, %v1552_v33 }
 0x4d3   : > { %1554 = vst [vmem:[#allocation2 + $0x1] sm:$0xff] %v1553_v34  ;;  %1677 = vmatprep.mubr.f32.mxu0 %v1553_v34 }
 0x4da   : > { %v1557_v0 = vld [vmem:[#allocation2 + $0x2] sm:$0xff] }
 0x4db   : > { %v1555_v35 = vld [vmem:[#allocation2] sm:$0xff]  ;;  %2446 = vmatmul.mubr.f32.vlgmr.msra.gmra.mxu1 %v1557_v0 }
 0x4dc   : > { %1678 = vmatmul.mubr.f32.vlgmr.msra.gmra.mxu0 %v1555_v35 }
 0x59b   : > { %v1749_v36 = vpop.f32.mrf.mxu1 }
 0x59c   : > { %v2218_v37 = vpop.f32.mrf.mxu0 }
 0x59d   : > { %v2447_v39 = vpop.f32.mrf.mxu1 }
 0x59e   : > { %v2219_v41 = vpop.f32.mrf.mxu0 }
 0x59f   : > { %v2220_v42 = vadd.f32 %v2219_v41, %v2218_v37 }
 0x5a1   : > { %v1680_v43 = vadd.f32 %v2220_v42, %v1921_v40 }
 0x5a3   : > { %v1750_v44 = vadd.f32 %v1749_v36, %v1680_v43 }
 0x5a5   : > { %v1753_v45 = vadd.f32 %v1750_v44, %v3222_v38 }
 0x5a7   : > { %1754 = vst [vmem:[%s542_s27] sm:$0xff] %v1753_v45 }
 0x5a8   : > { %2756 = shalt.err (!%p2753_p1)
}
 0x5a9   : > { %s2757_s17 = scalar_lea.hbm %s1767_s9, 128  ;;  %s2761_s18 = scalar_lea.hbm %s3300_s13, 256 }
 0x5aa   : > { %p2758_p3 = scmp.ne.s32.totalorder %s1767_s9, %s2757_s17  ;;  %p2762_p12 = scmp.lt.s32.totalorder %s1767_s9, %s3300_s13 }
 0x5ab   : > { %p2763_p0 = scmp.lt.s32.totalorder %s2761_s18, %s2757_s17 }
 0x5ac   : > { %p2759_p4 = pnand %p2758_p3, %p3336_p10 }
 0x5ad   : > { %p2764_p7 = por %p2763_p0, %p2762_p12 }
 0x5ae   : > { %p2760_p6 = pneg %p2759_p4 }
 0x5b0   : > { %p2765_p2 = pnand %p2764_p7, %p2760_p6 }
 0x5b2   : > { %2768 = shalt.err (!%p2765_p2)
}
 0x5b3   : > { %2474 = dma.vmem_to_hbm [thread:$0]  (%p3336_p10), %s1770_s3, 128, %s1767_s9, %s1756_s15  }
 0x5b4 PF: > { %s1781_s29 = sand.u32 1, %s2807_s25   ;;  %p3337_p8 = scmp.ne.s32.totalorder %s3326_s20, 0 }
 0x5b5   : > { %p3338_p11 = scmp.ge.s32.totalorder %s2819_s28, 2  ;;  %s1782_s27 = scalar_lea.sflag [#allocation5], %s1781_s29 }
 0x5b7   : > { %p2500_p13 = pnand %p3338_p11, %p3337_p8 }
 0x5b9   : > { %p2501_p5 = pneg %p2500_p13 }
 0x5bb   : > { %2802 = dma.done.wait (%p2501_p5), %s1782_s27, 128  }
 0x5bc   : > { %2804 = vsyncadd (%p2501_p5), %s1782_s27, 4294967168  ;;  %s3339_s5 = sld [smem:[#allocation21_spill]]  ;;  %p29_p9 = scmp.ge.s32.totalorder %s3024_s21, 4  }
 0x5bd   : > { %s3340_s27 = sld [smem:[#allocation22_spill]]  ;;  %s3341_s25 = smov %s2811_s26 }
 0x5be   : > { %s3343_s28 = smov %s3024_s21  ;;  %31 = sbr.rel (!%p29_p9) target bundleno = 15 (0xf), region = 141 }
 0x5c2   : > { %s3342_s26 = smov %s3339_s5 }
 0x5c3   :  { %1787 = vsyncpa [#allocation4], 1 }
 0x5c4   :  { %1789 = vsyncpa [#allocation4 + $0x1], 1 }
 0x5c5   :  { %1790 = vsyncpa [#allocation7], 1 }
 0x5c6   :  { %1791 = vsyncpa [#allocation10], 1 }
 0x5c7   :  { %1792 = vsyncpa [#allocation13], 1 }
 0x5c8   :  { %1793 = vsyncpa [#allocation5], 1 }
 0x5c9   :  { %1795 = vsyncpa [#allocation5 + $0x1], 1 }

</bundles_post_ra>
